<compile_context>
chip_gen: v7x
topology: tpu7x:2x2x1
jax: 0.10.0
libtpu: 0.0.40
codegen_flags: <defaults>
</compile_context>

<pallas_src>
import functools

import numpy as np
import jax
import jax.numpy as jnp
from jax.experimental import pallas as pl
from jax.experimental.pallas import tpu as pltpu


# ----------------------------------------------------------------------------- Pallas kernel

def _contrastive_kernel(y_ref, a_ref, c_ref, out_ref, *, inv_temp, neg_scale, K, Vp, S):
    """Supervised contrastive loss for K class-blocks of anchors (one grid step).

    y_ref   : SMEM (Gp,) int32  anchor class per class-block (scalar prefetch)
    a_ref   : (1, M, D) f32     M = K*Vp anchor rows (K class blocks, unnormalized, zero-padded)
    c_ref   : (Nc, D)  bf16     pre-normalized full queue (grid-invariant, VMEM resident)
    out_ref : (1, 1, M) f32     per-anchor loss (lane-dense row, M >= 128 when possible)
    """
    g = pl.program_id(0)

    a = a_ref[0]                                                          # (M, D) f32
    # F.normalize(dim=1) with 1/temperature folded into the anchor rows.
    # Zero-padded rows stay exactly 0 (no NaN).
    inv_norm = jax.lax.rsqrt(jnp.maximum(jnp.sum(a * a, axis=-1, keepdims=True), 1e-24))
    a_bf = (a * (inv_temp * inv_norm)).astype(jnp.bfloat16)               # (M, D) bf16 MXU operand

    c = c_ref[...]                                                        # (Nc, D) bf16

    # One big (M, D) x (D, Nc) matmul for the row max + softmax denominator   -> MXU
    logits = jax.lax.dot_general(a_bf, c, (((1,), (1,)), ((), ())),
                                 preferred_element_type=jnp.float32)      # (M, Nc)
    m = jnp.max(logits, axis=-1, keepdims=True)                           # (M, 1) row max, ALL cols
    sum_all = jnp.sum(jnp.exp(logits - m), axis=-1, keepdims=True)        # (M, 1)

    # Short static unroll over the K class sub-blocks: positives come straight out of the
    # resident queue via a dynamic sublane slice (no extra DMA stream, no duplicated queue).
    for j in range(K):
        cls = y_ref[g * K + j]
        start = cls * S
        if S % 8 == 0:
            start = pl.multiple_of(start, 8)                              # aligned sublane window
        # TODO(synk): if cache_size ever stops being a multiple of 8, pad the queue rows instead.
        pq = c_ref[pl.ds(start, S), :]                                    # (S, D) bf16 positives

        a_j = a_bf[j * Vp:(j + 1) * Vp, :]                                # (Vp, D) 16-aligned slice
        pos_logits = jax.lax.dot_general(a_j, pq, (((1,), (1,)), ((), ())),
                                         preferred_element_type=jnp.float32)  # (Vp, S)

        pos_shift = pos_logits - m[j * Vp:(j + 1) * Vp]                   # (Vp, S)
        exp_pos = jnp.exp(pos_shift)
        # negatives = full-row sum minus positive-block sum; clamp cancellation noise at 0.
        neg = jnp.maximum(sum_all[j * Vp:(j + 1) * Vp]
                          - jnp.sum(exp_pos, axis=-1, keepdims=True), 0.0)
        log_prob_pos = pos_shift - jnp.log(exp_pos + neg)                 # log only on positives

        # mean over positives == /cache_size; -(temperature/base_temperature)/S folded in.
        out_ref[0, 0, j * Vp:(j + 1) * Vp] = neg_scale * jnp.sum(log_prob_pos, axis=-1)


def contrastive_loss_pallas(X_anchor, y_anchor, queue, temperature, base_temperature):
    """X_anchor: (G, V, D) per-class anchors, y_anchor: (G,) class ids, queue: (C, S, D)."""
    X_anchor = jnp.asarray(X_anchor, jnp.float32)
    y_cls = jnp.asarray(y_anchor, jnp.int32)
    queue = jnp.asarray(queue, jnp.float32)

    G, V, D = X_anchor.shape
    C, S, _ = queue.shape
    Nc = C * S

    # Hoisted queue normalization (grid-invariant work done once), bf16 for the MXU.
    # Single copy: the resident (Nc, D) block doubles as the per-class positive source.
    qn = queue / jnp.maximum(
        jnp.sqrt(jnp.sum(queue * queue, axis=-1, keepdims=True)), 1e-12)
    c_bf = qn.astype(jnp.bfloat16).reshape(Nc, D)

    # Pad per-class views to a bf16-sublane multiple and batch K classes per grid step (M ~ 128).
    Vp = max(16, ((V + 15) // 16) * 16)
    K = max(1, 128 // Vp)
    while K > 1 and -(-G // K) < 2:      # keep >= 2 grid steps so v7x can shard across its 2 TCs
        K -= 1
    Gt = -(-G // K)                      # grid length
    M = K * Vp                           # anchor rows per step

    a = (jnp.zeros((Gt * K, Vp, D), jnp.float32)
         .at[:G, :V, :].set(X_anchor)
         .reshape(Gt, M, D))
    y_pad = jnp.zeros((Gt * K,), jnp.int32).at[:G].set(y_cls)

    kernel = functools.partial(
        _contrastive_kernel,
        inv_temp=float(1.0 / temperature),
        neg_scale=float(-(temperature / base_temperature) / S),
        K=K, Vp=Vp, S=S)

    cost = pl.CostEstimate(
        flops=int(2 * Gt * M * D * Nc + 2 * Gt * M * D * S),
        transcendentals=int(Gt * M * (Nc + S)),
        bytes_accessed=int(a.size * 4 + c_bf.size * 2 + y_pad.size * 4 + Gt * M * 4))

    def _run(single_buffer_queue):
        if single_buffer_queue:
            # Constant-index block needs no double buffer -> halves its VMEM footprint (v7x).
            q_spec = pl.BlockSpec((Nc, D), lambda g, y: (0, 0),
                                  pipeline_mode=pl.Buffered(1))
        else:
            q_spec = pl.BlockSpec((Nc, D), lambda g, y: (0, 0))
        return pl.pallas_call(
            kernel,
            out_shape=jax.ShapeDtypeStruct((Gt, 1, M), jnp.float32),
            grid_spec=pltpu.PrefetchScalarGridSpec(
                num_scalar_prefetch=1,
                grid=(Gt,),
                in_specs=[
                    pl.BlockSpec((1, M, D), lambda g, y: (g, 0, 0)),   # K class blocks of anchors
                    q_spec,                                            # full queue, VMEM resident
                ],
                out_specs=pl.BlockSpec((1, 1, M), lambda g, y: (g, 0, 0)),
            ),
            compiler_params=pltpu.CompilerParams(dimension_semantics=("parallel",)),
            cost_estimate=cost,
        )(y_pad, a, c_bf)

    try:
        per_row = _run(True)
    except Exception:
        # Fallback if this JAX build rejects single-buffer pipeline mode on an input BlockSpec.
        per_row = _run(False)

    # Slice off padded views / padded class-blocks BEFORE the mean (padded rows hold garbage).
    return jnp.mean(per_row.reshape(Gt * K, Vp)[:G, :V])


# ----------------------------------------------------------------------------- glue (numpy / JAX)

def hard_anchor_sampling(feats, labels, predict, *, order, ignore_label,
                         max_samples, max_views, rng):
    """Numpy port of PixelContrastLoss._hard_anchor_sampling (X=feats, y_hat=labels, y=predict).

    torch.randperm (unseeded CUDA RNG) is replaced with a seeded numpy permutation.
    # TODO(synk): dynamic-shape / randperm sampling has no clean Pallas equivalent.
    """
    B, HW, D = feats.shape
    classes, total = [], 0
    for ii in range(B):
        this_y = labels[ii]
        cs = [int(x) for x in np.unique(this_y)
              if int(x) not in ignore_label and int(x) in order]
        cs = [x for x in cs if int((this_y == x).sum()) > max_views]
        classes.append(cs)
        total += len(cs)
    if total == 0:
        return None, None
    n_view = min(max_samples // total, max_views)

    X_ = np.zeros((total, n_view, D), np.float32)
    y_ = np.zeros((total,), np.float32)
    ptr = 0
    for ii in range(B):
        this_y_hat, this_y = labels[ii], predict[ii]
        for cls_id in classes[ii]:
            hard = np.nonzero((this_y_hat == cls_id) & (this_y != cls_id))[0]
            easy = np.nonzero((this_y_hat == cls_id) & (this_y == cls_id))[0]
            nh, ne = len(hard), len(easy)
            if nh >= n_view / 2 and ne >= n_view / 2:
                nhk = n_view // 2
                nek = n_view - nhk
            elif nh >= n_view / 2:
                nek = ne
                nhk = n_view - nek
            elif ne >= n_view / 2:
                nhk = nh
                nek = n_view - nhk
            else:
                raise Exception("this should be never touched!")
            hard = hard[rng.permutation(nh)[:nhk]]
            easy = easy[rng.permutation(ne)[:nek]]
            idx = np.concatenate([hard, easy], axis=0)
            X_[ptr] = feats[ii, idx, :]
            y_[ptr] = cls_id
            ptr += 1
    return X_, y_


def _contrastive_ref(a, ya, c, yc, temperature, base_temperature, *, bf16_mxu=False):
    """Pure-JAX reference of the masked supervised-contrastive loss (kernel check)."""
    inv_t = 1.0 / temperature
    an = a / jnp.maximum(jnp.linalg.norm(a, axis=1, keepdims=True), 1e-12)
    cn = c / jnp.maximum(jnp.linalg.norm(c, axis=1, keepdims=True), 1e-12)
    if bf16_mxu:
        logits = jnp.dot((an * inv_t).astype(jnp.bfloat16), cn.astype(jnp.bfloat16).T,
                         preferred_element_type=jnp.float32)
    else:
        logits = jnp.dot(an, cn.T) * inv_t
    mask = (ya[:, None] == yc[None, :]).astype(jnp.float32)
    logits = logits - jnp.max(logits, axis=1, keepdims=True)
    exp_l = jnp.exp(logits)
    neg = jnp.sum(exp_l * (1.0 - mask), axis=1, keepdims=True)
    log_prob = logits - jnp.log(exp_l + neg)
    mlpp = jnp.sum(mask * log_prob, axis=1) / jnp.sum(mask, axis=1)
    return jnp.mean(-(temperature / base_temperature) * mlpp)


# ----------------------------------------------------------------------------- main

if __name__ == "__main__":
    # ---- deterministic synthetic "opts" -------------------------------------
    B, C, H, W = 2, 4, 32, 32          # batch, seg classes, spatial
    D = 32                             # embedding dim
    region_size, pixel_size = 8, 16
    cache_size = region_size + pixel_size      # opts.pixel_size + opts.region_size
    class_num = C                              # sum(opts.classes[:step+1])
    temperature, base_temperature = 0.1, 0.07
    contrast_weight = 1.0
    warm_epoch, cur_epoch = 0, 1
    order = list(range(C))
    ignore_label = [255]
    max_samples, max_views = 1024, 50

    # the exact-equivalence condition for _contrastive_hard's top-k selection
    assert cache_size <= 1024 and (class_num - 1) * cache_size <= 2048

    key = jax.random.PRNGKey(0)
    k1, k2, k3, k4, k5 = jax.random.split(key, 5)
    seg = jax.random.normal(k1, (B, C, H, W), jnp.float32)                 # preds['seg']
    embed = jax.random.normal(k2, (B, D, H, W), jnp.float32)               # preds['embed']
    target = jax.random.randint(k3, (B, H, W), 0, C).astype(jnp.int32)     # labels
    segment_queue = jax.random.normal(k4, (class_num, region_size, D), jnp.float32)
    pixel_queue = jax.random.normal(k5, (class_num, pixel_size, D), jnp.float32)

    # ---- MemContrastLoss.forward glue ---------------------------------------
    queue = jnp.concatenate([segment_queue, pixel_queue], axis=1)          # (class_num, cache, D)
    predict = jnp.argmax(seg, axis=1)                                      # (B, H, W)

    # ---- PixelContrastLoss.forward glue (NCHW -> (B, HW, D)) ----------------
    feats = jnp.transpose(embed, (0, 2, 3, 1)).reshape(B, H * W, D)
    labels_flat = target.reshape(B, -1)
    predict_flat = predict.reshape(B, -1)

    rng = np.random.RandomState(0)
    X_, y_ = hard_anchor_sampling(
        np.asarray(feats), np.asarray(labels_flat), np.asarray(predict_flat),
        order=order, ignore_label=ignore_label,
        max_samples=max_samples, max_views=max_views, rng=rng)
    assert X_ is not None
    total_classes, n_view, _ = X_.shape

    # ---- _contrastive_hard hot path (Pallas) ---------------------------------
    loss_contrast = contrastive_loss_pallas(X_, y_, queue, temperature, base_temperature)

    out = (contrast_weight * loss_contrast) if cur_epoch > warm_epoch else 0.0 * loss_contrast
    out = jax.block_until_ready(out)

    # ---- sanity checks against pure-JAX references ---------------------------
    anchor_feature = X_.reshape(total_classes * n_view, D)
    y_anchor = np.repeat(y_, n_view).astype(np.float32)
    X_contrast = np.asarray(queue).reshape(class_num * cache_size, D)
    y_contrast = np.repeat(np.arange(class_num, dtype=np.float32), cache_size)

    ref_bf16 = _contrastive_ref(jnp.asarray(anchor_feature), jnp.asarray(y_anchor),
                                jnp.asarray(X_contrast), jnp.asarray(y_contrast),
                                temperature, base_temperature, bf16_mxu=True)
    ref_f32 = _contrastive_ref(jnp.asarray(anchor_feature), jnp.asarray(y_anchor),
                               jnp.asarray(X_contrast), jnp.asarray(y_contrast),
                               temperature, base_temperature, bf16_mxu=False)

    np.testing.assert_allclose(np.asarray(out), np.asarray(contrast_weight * ref_bf16),
                               rtol=5e-3, atol=5e-3)   # tight, same bf16 MXU operands
    np.testing.assert_allclose(np.asarray(out), np.asarray(contrast_weight * ref_f32),
                               rtol=6e-2, atol=6e-2)   # loose, full-f32 reference
    assert np.isfinite(np.asarray(out))

    print("KERNEL_OK")
</pallas_src>

<mosaic_0001>
module attributes {stable_mosaic.version = 11 : i64} {
  func.func @_contrastive_kernel(%arg0: i32, %arg1: memref<8xi32, #tpu.memory_space<smem>>, %arg2: memref<1x128x32xf32, #tpu.memory_space<vmem>>, %arg3: memref<96x32xbf16, #tpu.memory_space<vmem>>, %arg4: memref<1x1x128xf32, #tpu.memory_space<vmem>>) attributes {dimension_semantics = [#tpu.dimension_semantics<parallel>], iteration_bounds = array<i64: 4>, scalar_prefetch = 1 : i64, scratch_operands = 0 : i64, tpu.core_type = #tpu.core_type<tc>, window_params = [{transform_indices = @transform_0, window_bounds = array<i64: 1, 128, 32>}, {pipeline_mode = #tpu.pipeline_mode<synchronous>, transform_indices = @transform_1, window_bounds = array<i64: 96, 32>}, {transform_indices = @transform_2, window_bounds = array<i64: 1, 1, 128>}]} {
    %c0 = arith.constant 0 : index
    %c0_0 = arith.constant 0 : index
    %c0_1 = arith.constant 0 : index
    %0 = vector.load %arg2[%c0, %c0_0, %c0_1] : memref<1x128x32xf32, #tpu.memory_space<vmem>>, vector<1x128x32xf32>
    %1 = vector.shape_cast %0 : vector<1x128x32xf32> to vector<128x32xf32>
    %2 = arith.mulf %1, %1 : vector<128x32xf32>
    %cst = arith.constant dense<0.000000e+00> : vector<128xf32>
    %3 = vector.multi_reduction <add>, %2, %cst [1] : vector<128x32xf32> to vector<128xf32>
    %4 = vector.shape_cast %3 : vector<128xf32> to vector<128x1xf32>
    %cst_2 = arith.constant 1.000000e-24 : f32
    %5 = vector.broadcast %cst_2 : f32 to vector<128x1xf32>
    %6 = arith.maximumf %4, %5 : vector<128x1xf32>
    %7 = math.rsqrt %6 : vector<128x1xf32>
    %cst_3 = arith.constant 1.000000e+01 : f32
    %8 = vector.broadcast %cst_3 : f32 to vector<128x1xf32>
    %9 = arith.mulf %8, %7 : vector<128x1xf32>
    %10 = vector.broadcast %9 : vector<128x1xf32> to vector<128x32xf32>
    %11 = arith.mulf %1, %10 : vector<128x32xf32>
    %12 = arith.truncf %11 : vector<128x32xf32> to vector<128x32xbf16>
    %c0_4 = arith.constant 0 : index
    %c0_5 = arith.constant 0 : index
    %13 = vector.load %arg3[%c0_4, %c0_5] : memref<96x32xbf16, #tpu.memory_space<vmem>>, vector<96x32xbf16>
    %cst_6 = arith.constant dense<0.000000e+00> : vector<128x96xf32>
    %14 = tpu.matmul %12, %13, %cst_6 {dimension_numbers = #tpu.dot_dimension_numbers<[1], [1], [0], [0], [0, 0, 1, 0], [], []>} : vector<128x32xbf16>, vector<96x32xbf16>, vector<128x96xf32> -> vector<128x96xf32>
    %cst_7 = arith.constant dense<0xFF800000> : vector<128xf32>
    %15 = vector.multi_reduction <maximumf>, %14, %cst_7 [1] : vector<128x96xf32> to vector<128xf32>
    %16 = vector.shape_cast %15 : vector<128xf32> to vector<128x1xf32>
    %17 = vector.broadcast %16 : vector<128x1xf32> to vector<128x96xf32>
    %18 = arith.subf %14, %17 : vector<128x96xf32>
    %19 = math.exp %18 : vector<128x96xf32>
    %cst_8 = arith.constant dense<0.000000e+00> : vector<128xf32>
    %20 = vector.multi_reduction <add>, %19, %cst_8 [1] : vector<128x96xf32> to vector<128xf32>
    %21 = vector.shape_cast %20 : vector<128xf32> to vector<128x1xf32>
    %c2_i32 = arith.constant 2 : i32
    %22 = arith.muli %arg0, %c2_i32 : i32
    %c0_i32 = arith.constant 0 : i32
    %23 = arith.addi %22, %c0_i32 : i32
    %24 = arith.index_cast %23 : i32 to index
    %25 = memref.load %arg1[%24] : memref<8xi32, #tpu.memory_space<smem>>
    %c24_i32 = arith.constant 24 : i32
    %26 = arith.muli %25, %c24_i32 : i32
    %27 = tpu.assume_multiple %26, 8 : i32
    %28 = arith.index_cast %27 : i32 to index
    %c0_9 = arith.constant 0 : index
    %29 = vector.load %arg3[%28, %c0_9] : memref<96x32xbf16, #tpu.memory_space<vmem>>, vector<24x32xbf16>
    %30 = vector.extract_strided_slice %12 {offsets = [0, 0], sizes = [64, 32], strides = [1, 1]} : vector<128x32xbf16> to vector<64x32xbf16>
    %cst_10 = arith.constant dense<0.000000e+00> : vector<64x24xf32>
    %31 = tpu.matmul %30, %29, %cst_10 {dimension_numbers = #tpu.dot_dimension_numbers<[1], [1], [0], [0], [0, 0, 1, 0], [], []>} : vector<64x32xbf16>, vector<24x32xbf16>, vector<64x24xf32> -> vector<64x24xf32>
    %32 = vector.extract_strided_slice %16 {offsets = [0, 0], sizes = [64, 1], strides = [1, 1]} : vector<128x1xf32> to vector<64x1xf32>
    %33 = vector.broadcast %32 : vector<64x1xf32> to vector<64x24xf32>
    %34 = arith.subf %31, %33 : vector<64x24xf32>
    %35 = math.exp %34 : vector<64x24xf32>
    %36 = vector.extract_strided_slice %21 {offsets = [0, 0], sizes = [64, 1], strides = [1, 1]} : vector<128x1xf32> to vector<64x1xf32>
    %cst_11 = arith.constant dense<0.000000e+00> : vector<64xf32>
    %37 = vector.multi_reduction <add>, %35, %cst_11 [1] : vector<64x24xf32> to vector<64xf32>
    %38 = vector.shape_cast %37 : vector<64xf32> to vector<64x1xf32>
    %39 = arith.subf %36, %38 : vector<64x1xf32>
    %cst_12 = arith.constant 0.000000e+00 : f32
    %40 = vector.broadcast %cst_12 : f32 to vector<64x1xf32>
    %41 = arith.maximumf %39, %40 : vector<64x1xf32>
    %42 = vector.broadcast %41 : vector<64x1xf32> to vector<64x24xf32>
    %43 = arith.addf %35, %42 : vector<64x24xf32>
    %44 = math.log %43 : vector<64x24xf32>
    %45 = arith.subf %34, %44 : vector<64x24xf32>
    %cst_13 = arith.constant dense<0.000000e+00> : vector<64xf32>
    %46 = vector.multi_reduction <add>, %45, %cst_13 [1] : vector<64x24xf32> to vector<64xf32>
    %cst_14 = arith.constant -0.0595238097 : f32
    %47 = vector.broadcast %cst_14 : f32 to vector<64xf32>
    %48 = arith.mulf %47, %46 : vector<64xf32>
    %c0_15 = arith.constant 0 : index
    %c0_16 = arith.constant 0 : index
    %c0_17 = arith.constant 0 : index
    %49 = vector.load %arg4[%c0_15, %c0_16, %c0_17] : memref<1x1x128xf32, #tpu.memory_space<vmem>>, vector<1x1x64xf32>
    %50 = vector.shape_cast %49 : vector<1x1x64xf32> to vector<64xf32>
    %51 = vector.shape_cast %48 : vector<64xf32> to vector<1x1x64xf32>
    tpu.vector_store %arg4[%c0_15, %c0_16, %c0_17], %51 {strides = array<i32>} : memref<1x1x128xf32, #tpu.memory_space<vmem>>, vector<1x1x64xf32>,
    %c2_i32_18 = arith.constant 2 : i32
    %52 = arith.muli %arg0, %c2_i32_18 : i32
    %c1_i32 = arith.constant 1 : i32
    %53 = arith.addi %52, %c1_i32 : i32
    %54 = arith.index_cast %53 : i32 to index
    %55 = memref.load %arg1[%54] : memref<8xi32, #tpu.memory_space<smem>>
    %c24_i32_19 = arith.constant 24 : i32
    %56 = arith.muli %55, %c24_i32_19 : i32
    %57 = tpu.assume_multiple %56, 8 : i32
    %58 = arith.index_cast %57 : i32 to index
    %c0_20 = arith.constant 0 : index
    %59 = vector.load %arg3[%58, %c0_20] : memref<96x32xbf16, #tpu.memory_space<vmem>>, vector<24x32xbf16>
    %60 = vector.extract_strided_slice %12 {offsets = [64, 0], sizes = [64, 32], strides = [1, 1]} : vector<128x32xbf16> to vector<64x32xbf16>
    %cst_21 = arith.constant dense<0.000000e+00> : vector<64x24xf32>
    %61 = tpu.matmul %60, %59, %cst_21 {dimension_numbers = #tpu.dot_dimension_numbers<[1], [1], [0], [0], [0, 0, 1, 0], [], []>} : vector<64x32xbf16>, vector<24x32xbf16>, vector<64x24xf32> -> vector<64x24xf32>
    %62 = vector.extract_strided_slice %16 {offsets = [64, 0], sizes = [64, 1], strides = [1, 1]} : vector<128x1xf32> to vector<64x1xf32>
    %63 = vector.broadcast %62 : vector<64x1xf32> to vector<64x24xf32>
    %64 = arith.subf %61, %63 : vector<64x24xf32>
    %65 = math.exp %64 : vector<64x24xf32>
    %66 = vector.extract_strided_slice %21 {offsets = [64, 0], sizes = [64, 1], strides = [1, 1]} : vector<128x1xf32> to vector<64x1xf32>
    %cst_22 = arith.constant dense<0.000000e+00> : vector<64xf32>
    %67 = vector.multi_reduction <add>, %65, %cst_22 [1] : vector<64x24xf32> to vector<64xf32>
    %68 = vector.shape_cast %67 : vector<64xf32> to vector<64x1xf32>
    %69 = arith.subf %66, %68 : vector<64x1xf32>
    %cst_23 = arith.constant 0.000000e+00 : f32
    %70 = vector.broadcast %cst_23 : f32 to vector<64x1xf32>
    %71 = arith.maximumf %69, %70 : vector<64x1xf32>
    %72 = vector.broadcast %71 : vector<64x1xf32> to vector<64x24xf32>
    %73 = arith.addf %65, %72 : vector<64x24xf32>
    %74 = math.log %73 : vector<64x24xf32>
    %75 = arith.subf %64, %74 : vector<64x24xf32>
    %cst_24 = arith.constant dense<0.000000e+00> : vector<64xf32>
    %76 = vector.multi_reduction <add>, %75, %cst_24 [1] : vector<64x24xf32> to vector<64xf32>
    %cst_25 = arith.constant -0.0595238097 : f32
    %77 = vector.broadcast %cst_25 : f32 to vector<64xf32>
    %78 = arith.mulf %77, %76 : vector<64xf32>
    %c0_26 = arith.constant 0 : index
    %c0_27 = arith.constant 0 : index
    %c64 = arith.constant 64 : index
    %79 = vector.load %arg4[%c0_26, %c0_27, %c64] : memref<1x1x128xf32, #tpu.memory_space<vmem>>, vector<1x1x64xf32>
    %80 = vector.shape_cast %79 : vector<1x1x64xf32> to vector<64xf32>
    %81 = vector.shape_cast %78 : vector<64xf32> to vector<1x1x64xf32>
    tpu.vector_store %arg4[%c0_26, %c0_27, %c64], %81 {strides = array<i32>} : memref<1x1x128xf32, #tpu.memory_space<vmem>>, vector<1x1x64xf32>,
    return
  }
  func.func @transform_0(%arg0: i32, %arg1: memref<8xi32, #tpu.memory_space<smem>>) -> (i32, i32, i32) {
    %c0_i32 = arith.constant 0 : i32
    %c0_i32_0 = arith.constant 0 : i32
    %c0_i32_1 = arith.constant 0 : i32
    return %arg0, %c0_i32, %c0_i32_0 : i32, i32, i32
  }
  func.func @transform_1(%arg0: i32, %arg1: memref<8xi32, #tpu.memory_space<smem>>) -> (i32, i32) {
    %c0_i32 = arith.constant 0 : i32
    %c0_i32_0 = arith.constant 0 : i32
    %c0_i32_1 = arith.constant 0 : i32
    return %c0_i32, %c0_i32_0 : i32, i32
  }
  func.func @transform_2(%arg0: i32, %arg1: memref<8xi32, #tpu.memory_space<smem>>) -> (i32, i32, i32) {
    %c0_i32 = arith.constant 0 : i32
    %c0_i32_0 = arith.constant 0 : i32
    %c0_i32_1 = arith.constant 0 : i32
    return %arg0, %c0_i32, %c0_i32_0 : i32, i32, i32
  }
}

module attributes {stable_mosaic.version = 11 : i64} {
  func.func @_contrastive_kernel(%arg0: i32, %arg1: memref<8xi32, #tpu.memory_space<smem>>, %arg2: memref<1x128x32xf32, #tpu.memory_space<vmem>>, %arg3: memref<96x32xbf16, #tpu.memory_space<vmem>>, %arg4: memref<1x1x128xf32, #tpu.memory_space<vmem>>) attributes {dimension_semantics = [#tpu.dimension_semantics<parallel>], iteration_bounds = array<i64: 4>, scalar_prefetch = 1 : i64, scratch_operands = 0 : i64, tpu.core_type = #tpu.core_type<tc>, window_params = [{transform_indices = @transform_0, window_bounds = array<i64: 1, 128, 32>}, {pipeline_mode = #tpu.pipeline_mode<synchronous>, transform_indices = @transform_1, window_bounds = array<i64: 96, 32>}, {transform_indices = @transform_2, window_bounds = array<i64: 1, 1, 128>}]} {
    %c0 = arith.constant 0 : index
    %c0_0 = arith.constant 0 : index
    %c0_1 = arith.constant 0 : index
    %0 = vector.load %arg2[%c0, %c0_0, %c0_1] : memref<1x128x32xf32, #tpu.memory_space<vmem>>, vector<1x128x32xf32>
    %1 = vector.shape_cast %0 : vector<1x128x32xf32> to vector<128x32xf32>
    %2 = arith.mulf %1, %1 : vector<128x32xf32>
    %cst = arith.constant dense<0.000000e+00> : vector<128xf32>
    %3 = vector.multi_reduction <add>, %2, %cst [1] : vector<128x32xf32> to vector<128xf32>
    %4 = vector.shape_cast %3 : vector<128xf32> to vector<128x1xf32>
    %cst_2 = arith.constant 1.000000e-24 : f32
    %5 = vector.broadcast %cst_2 : f32 to vector<128x1xf32>
    %6 = arith.maximumf %4, %5 : vector<128x1xf32>
    %7 = math.rsqrt %6 : vector<128x1xf32>
    %cst_3 = arith.constant 1.000000e+01 : f32
    %8 = vector.broadcast %cst_3 : f32 to vector<128x1xf32>
    %9 = arith.mulf %8, %7 : vector<128x1xf32>
    %10 = vector.broadcast %9 : vector<128x1xf32> to vector<128x32xf32>
    %11 = arith.mulf %1, %10 : vector<128x32xf32>
    %12 = arith.truncf %11 : vector<128x32xf32> to vector<128x32xbf16>
    %c0_4 = arith.constant 0 : index
    %c0_5 = arith.constant 0 : index
    %13 = vector.load %arg3[%c0_4, %c0_5] : memref<96x32xbf16, #tpu.memory_space<vmem>>, vector<96x32xbf16>
    %cst_6 = arith.constant dense<0.000000e+00> : vector<128x96xf32>
    %14 = tpu.matmul %12, %13, %cst_6 {dimension_numbers = #tpu.dot_dimension_numbers<[1], [1], [0], [0], [0, 0, 1, 0], [], []>} : vector<128x32xbf16>, vector<96x32xbf16>, vector<128x96xf32> -> vector<128x96xf32>
    %cst_7 = arith.constant dense<0xFF800000> : vector<128xf32>
    %15 = vector.multi_reduction <maximumf>, %14, %cst_7 [1] : vector<128x96xf32> to vector<128xf32>
    %16 = vector.shape_cast %15 : vector<128xf32> to vector<128x1xf32>
    %17 = vector.broadcast %16 : vector<128x1xf32> to vector<128x96xf32>
    %18 = arith.subf %14, %17 : vector<128x96xf32>
    %19 = math.exp %18 : vector<128x96xf32>
    %cst_8 = arith.constant dense<0.000000e+00> : vector<128xf32>
    %20 = vector.multi_reduction <add>, %19, %cst_8 [1] : vector<128x96xf32> to vector<128xf32>
    %21 = vector.shape_cast %20 : vector<128xf32> to vector<128x1xf32>
    %c2_i32 = arith.constant 2 : i32
    %22 = arith.muli %arg0, %c2_i32 : i32
    %c0_i32 = arith.constant 0 : i32
    %23 = arith.addi %22, %c0_i32 : i32
    %24 = arith.index_cast %23 : i32 to index
    %25 = memref.load %arg1[%24] : memref<8xi32, #tpu.memory_space<smem>>
    %c24_i32 = arith.constant 24 : i32
    %26 = arith.muli %25, %c24_i32 : i32
    %27 = tpu.assume_multiple %26, 8 : i32
    %28 = arith.index_cast %27 : i32 to index
    %c0_9 = arith.constant 0 : index
    %29 = vector.load %arg3[%28, %c0_9] : memref<96x32xbf16, #tpu.memory_space<vmem>>, vector<24x32xbf16>
    %30 = vector.extract_strided_slice %12 {offsets = [0, 0], sizes = [64, 32], strides = [1, 1]} : vector<128x32xbf16> to vector<64x32xbf16>
    %cst_10 = arith.constant dense<0.000000e+00> : vector<64x24xf32>
    %31 = tpu.matmul %30, %29, %cst_10 {dimension_numbers = #tpu.dot_dimension_numbers<[1], [1], [0], [0], [0, 0, 1, 0], [], []>} : vector<64x32xbf16>, vector<24x32xbf16>, vector<64x24xf32> -> vector<64x24xf32>
    %32 = vector.extract_strided_slice %16 {offsets = [0, 0], sizes = [64, 1], strides = [1, 1]} : vector<128x1xf32> to vector<64x1xf32>
    %33 = vector.broadcast %32 : vector<64x1xf32> to vector<64x24xf32>
    %34 = arith.subf %31, %33 : vector<64x24xf32>
    %35 = math.exp %34 : vector<64x24xf32>
    %36 = vector.extract_strided_slice %21 {offsets = [0, 0], sizes = [64, 1], strides = [1, 1]} : vector<128x1xf32> to vector<64x1xf32>
    %cst_11 = arith.constant dense<0.000000e+00> : vector<64xf32>
    %37 = vector.multi_reduction <add>, %35, %cst_11 [1] : vector<64x24xf32> to vector<64xf32>
    %38 = vector.shape_cast %37 : vector<64xf32> to vector<64x1xf32>
    %39 = arith.subf %36, %38 : vector<64x1xf32>
    %cst_12 = arith.constant 0.000000e+00 : f32
    %40 = vector.broadcast %cst_12 : f32 to vector<64x1xf32>
    %41 = arith.maximumf %39, %40 : vector<64x1xf32>
    %42 = vector.broadcast %41 : vector<64x1xf32> to vector<64x24xf32>
    %43 = arith.addf %35, %42 : vector<64x24xf32>
    %44 = math.log %43 : vector<64x24xf32>
    %45 = arith.subf %34, %44 : vector<64x24xf32>
    %cst_13 = arith.constant dense<0.000000e+00> : vector<64xf32>
    %46 = vector.multi_reduction <add>, %45, %cst_13 [1] : vector<64x24xf32> to vector<64xf32>
    %cst_14 = arith.constant -0.0595238097 : f32
    %47 = vector.broadcast %cst_14 : f32 to vector<64xf32>
    %48 = arith.mulf %47, %46 : vector<64xf32>
    %c0_15 = arith.constant 0 : index
    %c0_16 = arith.constant 0 : index
    %c0_17 = arith.constant 0 : index
    %49 = vector.load %arg4[%c0_15, %c0_16, %c0_17] : memref<1x1x128xf32, #tpu.memory_space<vmem>>, vector<1x1x64xf32>
    %50 = vector.shape_cast %49 : vector<1x1x64xf32> to vector<64xf32>
    %51 = vector.shape_cast %48 : vector<64xf32> to vector<1x1x64xf32>
    tpu.vector_store %arg4[%c0_15, %c0_16, %c0_17], %51 {strides = array<i32>} : memref<1x1x128xf32, #tpu.memory_space<vmem>>, vector<1x1x64xf32>,
    %c2_i32_18 = arith.constant 2 : i32
    %52 = arith.muli %arg0, %c2_i32_18 : i32
    %c1_i32 = arith.constant 1 : i32
    %53 = arith.addi %52, %c1_i32 : i32
    %54 = arith.index_cast %53 : i32 to index
    %55 = memref.load %arg1[%54] : memref<8xi32, #tpu.memory_space<smem>>
    %c24_i32_19 = arith.constant 24 : i32
    %56 = arith.muli %55, %c24_i32_19 : i32
    %57 = tpu.assume_multiple %56, 8 : i32
    %58 = arith.index_cast %57 : i32 to index
    %c0_20 = arith.constant 0 : index
    %59 = vector.load %arg3[%58, %c0_20] : memref<96x32xbf16, #tpu.memory_space<vmem>>, vector<24x32xbf16>
    %60 = vector.extract_strided_slice %12 {offsets = [64, 0], sizes = [64, 32], strides = [1, 1]} : vector<128x32xbf16> to vector<64x32xbf16>
    %cst_21 = arith.constant dense<0.000000e+00> : vector<64x24xf32>
    %61 = tpu.matmul %60, %59, %cst_21 {dimension_numbers = #tpu.dot_dimension_numbers<[1], [1], [0], [0], [0, 0, 1, 0], [], []>} : vector<64x32xbf16>, vector<24x32xbf16>, vector<64x24xf32> -> vector<64x24xf32>
    %62 = vector.extract_strided_slice %16 {offsets = [64, 0], sizes = [64, 1], strides = [1, 1]} : vector<128x1xf32> to vector<64x1xf32>
    %63 = vector.broadcast %62 : vector<64x1xf32> to vector<64x24xf32>
    %64 = arith.subf %61, %63 : vector<64x24xf32>
    %65 = math.exp %64 : vector<64x24xf32>
    %66 = vector.extract_strided_slice %21 {offsets = [64, 0], sizes = [64, 1], strides = [1, 1]} : vector<128x1xf32> to vector<64x1xf32>
    %cst_22 = arith.constant dense<0.000000e+00> : vector<64xf32>
    %67 = vector.multi_reduction <add>, %65, %cst_22 [1] : vector<64x24xf32> to vector<64xf32>
    %68 = vector.shape_cast %67 : vector<64xf32> to vector<64x1xf32>
    %69 = arith.subf %66, %68 : vector<64x1xf32>
    %cst_23 = arith.constant 0.000000e+00 : f32
    %70 = vector.broadcast %cst_23 : f32 to vector<64x1xf32>
    %71 = arith.maximumf %69, %70 : vector<64x1xf32>
    %72 = vector.broadcast %71 : vector<64x1xf32> to vector<64x24xf32>
    %73 = arith.addf %65, %72 : vector<64x24xf32>
    %74 = math.log %73 : vector<64x24xf32>
    %75 = arith.subf %64, %74 : vector<64x24xf32>
    %cst_24 = arith.constant dense<0.000000e+00> : vector<64xf32>
    %76 = vector.multi_reduction <add>, %75, %cst_24 [1] : vector<64x24xf32> to vector<64xf32>
    %cst_25 = arith.constant -0.0595238097 : f32
    %77 = vector.broadcast %cst_25 : f32 to vector<64xf32>
    %78 = arith.mulf %77, %76 : vector<64xf32>
    %c0_26 = arith.constant 0 : index
    %c0_27 = arith.constant 0 : index
    %c64 = arith.constant 64 : index
    %79 = vector.load %arg4[%c0_26, %c0_27, %c64] : memref<1x1x128xf32, #tpu.memory_space<vmem>>, vector<1x1x64xf32>
    %80 = vector.shape_cast %79 : vector<1x1x64xf32> to vector<64xf32>
    %81 = vector.shape_cast %78 : vector<64xf32> to vector<1x1x64xf32>
    tpu.vector_store %arg4[%c0_26, %c0_27, %c64], %81 {strides = array<i32>} : memref<1x1x128xf32, #tpu.memory_space<vmem>>, vector<1x1x64xf32>,
    return
  }
  func.func @transform_0(%arg0: i32, %arg1: memref<8xi32, #tpu.memory_space<smem>>) -> (i32, i32, i32) {
    %c0_i32 = arith.constant 0 : i32
    %c0_i32_0 = arith.constant 0 : i32
    %c0_i32_1 = arith.constant 0 : i32
    return %arg0, %c0_i32, %c0_i32_0 : i32, i32, i32
  }
  func.func @transform_1(%arg0: i32, %arg1: memref<8xi32, #tpu.memory_space<smem>>) -> (i32, i32) {
    %c0_i32 = arith.constant 0 : i32
    %c0_i32_0 = arith.constant 0 : i32
    %c0_i32_1 = arith.constant 0 : i32
    return %c0_i32, %c0_i32_0 : i32, i32
  }
  func.func @transform_2(%arg0: i32, %arg1: memref<8xi32, #tpu.memory_space<smem>>) -> (i32, i32, i32) {
    %c0_i32 = arith.constant 0 : i32
    %c0_i32_0 = arith.constant 0 : i32
    %c0_i32_1 = arith.constant 0 : i32
    return %arg0, %c0_i32, %c0_i32_0 : i32, i32, i32
  }
}

</mosaic_0001>

<bundles_post_ra>
// kernel: tpu_custom_call.1
= control target key start
LH: loop header
LB: loop body
LE: loop exit
PB: predicated region body
PF: predicated region fallthrough
CT: control target
= control target key end

     0   :  { %s2331_s0 = inlined_call_operand.vmem [shape: s32[8], index: 0, kind: input, shape index: {}]   ;;  %s2332_s1 = inlined_call_operand.vmem [shape: f32[4,128,32], index: 1, kind: input, shape index: {}]   ;;  %s2333_s2 = inlined_call_operand.vmem [shape: bf16[96,32], index: 2, kind: input, shape index: {}]   ;;  %s2334_s3 = inlined_call_operand.hbm [shape: f32[4,1,128], index: 3, kind: output, shape index: {}]  }
   0x1   :  { %s8_s14 = sshll.u32 %s2331_s0, 4  ;;  %s9_s14 = int_to_ptr.vmem [resolvable:$true] %s8_s14 }
   0x2   :  { %s1571_s15 = scalar_lea.vmem %s9_s14, 16  ;;  %p1576_p1 = scmp.lt.s32.totalorder %s9_s14, %s9_s14 }
   0x3   :  { %p1572_p0 = scmp.ne.s32.totalorder %s9_s14, %s1571_s15  ;;  %p1577_p2 = scmp.lt.s32.totalorder %s1571_s15, %s1571_s15 }
   0x5   :  { %p1578_p3 = por %p1577_p2, %p1576_p1 }
   0x7   :  { %p1579_p4 = pnand %p1578_p3, %p1572_p0 }
   0x9   :  { %1582 = shalt.err (!%p1579_p4)  }
   0xa   :  { %s1649_s16 = smov [#allocation3]  }
   0xb   :  { %11 = dma.vmem_to_smem %s9_s14, 16, %s1649_s16, [#allocation2] }
   0xc   :  { %1627 = dma.done.wait [#allocation2], 16 }
   0xd   :  { %1628 = vsyncadd [#allocation2], 4294967280 }
   0xe   :  { %13 = sfence }
   0xf   :  { %14 = vsyncpa [#allocation5], 0 }
  0x10   :  { %16 = vsyncpa [#allocation5 + $0x1], 0  ;;  %s1674_s17 = smov 0   ;;  %s1676_s18 = smov 0  }
  0x11   :  { %s1678_s0 = smov 0   ;;  %s1680_s19 = smov 0  }
  0x12 LB: > { %s1695_s20 = sadd.s32 4294967295, %s1647_s19   ;;  %s1266_s21 = sadd.s32 4294967294, %s1647_s19   ;;  %s1647_s19 = sphi %s1680_s19, %s2340_s19   ;;  %s1643_s0 = sphi %s1678_s0, %s2339_s0   ;;  %s1639_s18 = sphi %s1676_s18, %s2338_s18   ;;  %s1635_s17 = sphi %s1674_s17, %s2337_s17  }
  0x13   : > { %s1699_s22 = sadd.s32 1, %s1647_s19   ;;  %s76_s23 = sadd.s32 1, %s1643_s0 }
  0x14   : > { %s73_s24 = ssub.s32 %s1647_s19, %s1699_s22  ;;  %p86_p5 = scmp.ne.s32.totalorder %s1643_s0, %s1639_s18 }
  0x15   : > { %p74_p6 = scmp.eq.s32.totalorder %s73_s24, 0  ;;  %p87_p7 = scmp.eq.s32.totalorder %s1695_s20, 3 }
  0x16   : > { %p92_p8 = scmp.ne.s32.totalorder %s1639_s18, %s1635_s17  ;;  %p93_p9 = scmp.eq.s32.totalorder %s1266_s21, 3 }
  0x17   : > { %s1710_s25 = scalar_select %p74_p6, %s1643_s0, %s76_s23  }
  0x18   : > { %p1712_p10 = por %p87_p7, %p86_p5  ;;  %p1716_p11 = por %p93_p9, %p92_p8 }
  0x19   : > { %p1269_p12 = scmp.ge.s32.totalorder %s1647_s19, 1  ;;  %p122_p13 = scmp.lt.s32.totalorder %s1647_s19, 5 }
  0x1b   : > { %p123_p0 = pnand %p1269_p12, %p122_p13 }
  0x1c   : > { %p143_p1 = scmp.lt.s32.totalorder (!%p123_p0), %s1695_s20, 3  ;;  %vm181_vm0 = vcmask (!%p123_p0), 261120   ;;  %v1433_v0 = vld [vmem:[%s2333_s2] sm:$0xff] (!%p123_p0)   ;;  %v1434_v1 = vld [vmem:[%s2333_s2 + $0x8] sm:$0xff] (!%p123_p0)   ;;  %v1435_v16 = vld [vmem:[%s2333_s2 + $0x10] sm:$0xff] (!%p123_p0)   ;;  %s1286_s12 = sshll.u32 (!%p123_p0), %s1695_s20, 1 }
  0x1d   : > { %126 = sbr.rel (%p123_p0) target bundleno = 973 (0x3cd), region = 28  ;;  %1383 = vmatprep.subr.msk.bf16.mxu0 (!%p123_p0), %vm181_vm0, %v1433_v0  ;;  %v369_v2 = vsel (!%p123_p0), %vm181_vm0, %v1433_v0, 0  ;;  %v372_v15 = vsel (!%p123_p0), %vm181_vm0, %v1434_v1, 0  ;;  %v375_v29 = vsel (!%p123_p0), %vm181_vm0, %v1435_v16, 0  ;;  %s629_s13 = sld [smem:[#allocation3 + %s1286_s12]] (!%p123_p0)  ;;  %v1436_v41 = vld [vmem:[%s2333_s2 + $0x18] sm:$0xff] (!%p123_p0)  }
  0x1e   : > { %1332 = vmatpush3.bf16.xpose.msra.mxu0 (!%p123_p0), %v369_v2  ;;  %v378_v43 = vsel (!%p123_p0), %vm181_vm0, %v1436_v41, 0  ;;  %v1437_v54 = vld [vmem:[%s2333_s2 + $0x20] sm:$0xff] (!%p123_p0)   ;;  %s912_s5 = sadd.s32 (!%p123_p0), 1, %s1286_s12  ;;  %v1440_v61 = vld [vmem:[%s2333_s2 + $0x28] sm:$0xff] (!%p123_p0)   ;;  %vm483_vm1 = vcmask (!%p123_p0), 785408   ;;  %vm741_vm2 = vcmask (!%p123_p0), 195584  }
  0x1f   : > { %1384 = vmatprep.subr.msk.bf16.mxu0 (!%p123_p0), %vm181_vm0, %v1434_v1  ;;  %v381_v56 = vsel (!%p123_p0), %vm181_vm0, %v1437_v54, 0  ;;  %v384_v62 = vsel (!%p123_p0), %vm181_vm0, %v1440_v61, 0  ;;  %vm865_vm3 = vcmask (!%p123_p0), 130112   ;;  %vm872_vm4 = vcmask (!%p123_p0), 195712   ;;  %s141_s15 = sand.u32 (!%p123_p0), 1, %s1639_s18   ;;  %s1650_s4 = smov (!%p123_p0), [#allocation4]  }
  0x20   : > { %vm879_vm5 = vcmask (!%p123_p0), 261312   ;;  %vm886_vm6 = vcmask (!%p123_p0), 326912   ;;  %vm893_vm7 = vcmask (!%p123_p0), 392512   ;;  %vm1147_vm8 = vcmask (!%p123_p0), 654912  }
  0x21   : > { %vm900_vm9 = vcmask (!%p123_p0), 458112   ;;  %vm1154_vm10 = vcmask (!%p123_p0), 720512   ;;  %vm907_vm11 = vcmask (!%p123_p0), 523712   ;;  %vm910_vm12 = vcmask (!%p123_p0), 516096  }
  0x22   : > { %vm1161_vm13 = vcmask (!%p123_p0), 786112   ;;  %vm1168_vm14 = vcmask (!%p123_p0), 851712   ;;  %vm1175_vm15 = vcmask (!%p123_p0), 917312  }
  0x23   : > { %s630_s16 = smul.u32 (!%p123_p0), 24, %s629_s13 }
  0x24   : > { %s144_s30 = scalar_select %p143_p1, %s1695_s20, 3 }
  0x25   : > { %s631_s21 = sshra.s32 %s630_s16, 3  ;;  %s142_s16 = scalar_lea.vmem [#allocation4], %s141_s15 }
  0x26   : > { %s1304_s6 = sshll.u32 %s144_s30, 7  ;;  %1334 = vmatpush3.bf16.xpose.msra.mxu0 %v372_v15  ;;  %s1287_s23 = sshll.u32 %s631_s21, 2 }
  0x27   : > { %s1735_s9 = scalar_lea.vmem %s2332_s1, %s1304_s6  ;;  %1385 = vmatprep.subr.msk.bf16.mxu0 %vm181_vm0, %v1435_v16  ;;  %s634_s29 = scalar_lea.vmem %s2333_s2, %s1287_s23 }
  0x28   : > { %v1739_v3 = vld [vmem:[%s1735_s9 + $0x10] sm:$0xff]  ;;  %v1742_v4 = vld [vmem:[%s1735_s9] sm:$0xff]  ;;  %v1745_v5 = vld [vmem:[%s1735_s9 + $0x18] sm:$0xff]  ;;  %s913_s6 = sld [smem:[#allocation3 + %s912_s5]]  ;;  %s1301_s21 = sshll.u32 %s1695_s20, 4 }
  0x29   : > { %v167_v6 = vmul.f32 %v1739_v3, %v1739_v3  ;;  %v165_v7 = vmul.f32 %v1742_v4, %v1742_v4  ;;  %v168_v8 = vmul.f32 %v1745_v5, %v1745_v5  ;;  %v1754_v9 = vld [vmem:[%s1735_s9 + $0x8] sm:$0xff]  ;;  %v1762_v12 = vld [vmem:[%s1735_s9 + $0x20] sm:$0xff]  ;;  %v1777_v21 = vld [vmem:[%s1735_s9 + $0x38] sm:$0xff]  ;;  %s1207_s23 = sshll.u32 %s142_s16, 4  ;;  %s1195_s20 = scalar_lea.sflag [#allocation5], %s141_s15  ;;  %s2289_s23 = int_to_ptr.vmem [resolvable:$true] %s1207_s23 }
  0x2a   : > { %v166_v10 = vmul.f32 %v1754_v9, %v1754_v9  ;;  %v1759_v11 = vld [vmem:[%s1735_s9 + $0x28] sm:$0xff]  ;;  %v169_v20 = vmul.f32 %v1762_v12, %v1762_v12  ;;  %v1780_v22 = vld [vmem:[%s1735_s9 + $0x30] sm:$0xff]  ;;  %v172_v25 = vmul.f32 %v1777_v21, %v1777_v21  ;;  %v1793_v28 = vld [vmem:[%s1735_s9 + $0x40] sm:$0xff]  ;;  %s1583_s30 = scalar_lea.vmem %s2289_s23, 16  ;;  %s1587_s5 = sshll.u32 %s1650_s4, 4  ;;  %s1588_s5 = int_to_ptr.vmem [resolvable:$false] %s1587_s5 }
  0x2b   : > { %v188_v13 = vsel %vm181_vm0, %v167_v6, 0.0  ;;  %v182_v14 = vsel %vm181_vm0, %v165_v7, 0.0  ;;  %v191_v17 = vsel %vm181_vm0, %v168_v8, 0.0  ;;  %v170_v19 = vmul.f32 %v1759_v11, %v1759_v11  ;;  %v1790_v27 = vld [vmem:[%s1735_s9 + $0x48] sm:$0xff]  ;;  %v1804_v34 = vld [vmem:[%s1735_s9 + $0x58] sm:$0xff]  ;;  %v1807_v35 = vld [vmem:[%s1735_s9 + $0x50] sm:$0xff]  ;;  %p1584_p2 = scmp.ne.s32.totalorder %s2289_s23, %s1583_s30  ;;  %p1590_p5 = scmp.lt.s32.totalorder %s2289_s23, %s1588_s5 }
  0x2c   : > { %189 = vadd.xlane.f32.xlu1 %v188_v13  ;;  %183 = vadd.xlane.f32.xlu0 %v182_v14  ;;  %v185_v18 = vsel %vm181_vm0, %v166_v10, 0.0  ;;  %v194_v24 = vsel %vm181_vm0, %v169_v20, 0.0  ;;  %v171_v26 = vmul.f32 %v1780_v22, %v1780_v22  ;;  %v203_v30 = vsel %vm181_vm0, %v172_v25, 0.0  ;;  %v1818_v40 = vld [vmem:[%s1735_s9 + $0x68] sm:$0xff]  ;;  %v1824_v42 = vld [vmem:[%s1735_s9 + $0x60] sm:$0xff]  ;;  %v1835_v48 = vld [vmem:[%s1735_s9 + $0x78] sm:$0xff] }
  0x2d   : > { %v197_v23 = vsel %vm181_vm0, %v170_v19, 0.0  ;;  %v174_v32 = vmul.f32 %v1790_v27, %v1790_v27  ;;  %v173_v33 = vmul.f32 %v1793_v28, %v1793_v28  ;;  %v176_v38 = vmul.f32 %v1804_v34, %v1804_v34  ;;  %v1838_v49 = vld [vmem:[%s1735_s9 + $0x70] sm:$0xff]  ;;  %v1438_v55 = vld [vmem:[%s634_s29] sm:$0xff]   ;;  %v1439_v60 = vld [vmem:[%s634_s29 + $0x8] ss:$0 sps:$4 sm:$0xff]   ;;  %s2287_s29 = scalar_lea.hbm %s2334_s3, %s1301_s21  ;;  %p1585_p3 = pnand %p1584_p2, %p1712_p10 }
  0x2e   : > { %v200_v31 = vsel %vm181_vm0, %v171_v26, 0.0  ;;  %1336 = vmatpush3.bf16.xpose.msra.mxu0 %v375_v29  ;;  %v175_v39 = vmul.f32 %v1807_v35, %v1807_v35  ;;  %v178_v44 = vmul.f32 %v1818_v40, %v1818_v40  ;;  %v177_v47 = vmul.f32 %v1824_v42, %v1824_v42  ;;  %1389 = vmatprep.subr.msk.bf16.mxu1 %vm181_vm0, %v1438_v55  ;;  %s914_s9 = smul.u32 24, %s913_s6  ;;  %s1589_s6 = scalar_lea.vmem %s1588_s5, 32 }
  0x2f   : > { %v209_v36 = vsel %vm181_vm0, %v174_v32, 0.0  ;;  %v206_v37 = vsel %vm181_vm0, %v173_v33, 0.0  ;;  %1386 = vmatprep.subr.msk.bf16.mxu0 %vm181_vm0, %v1436_v41  ;;  %v215_v45 = vsel %vm181_vm0, %v176_v38, 0.0  ;;  %v180_v52 = vmul.f32 %v1835_v48, %v1835_v48  ;;  %p1586_p4 = pneg %p1585_p3  ;;  %p1591_p6 = scmp.lt.s32.totalorder %s1589_s6, %s1583_s30 }
  0x30   : > { %192 = vadd.xlane.f32.xlu1 %v191_v17  ;;  %186 = vadd.xlane.f32.xlu0 %v185_v18  ;;  %v212_v46 = vsel %vm181_vm0, %v175_v39, 0.0  ;;  %v221_v50 = vsel %vm181_vm0, %v178_v44, 0.0  ;;  %v218_v51 = vsel %vm181_vm0, %v177_v47, 0.0  ;;  %v179_v53 = vmul.f32 %v1838_v49, %v1838_v49  ;;  %s915_s10 = sshra.s32 %s914_s9, 3 }
  0x31   : > { %v647_v57 = vsel %vm181_vm0, %v1438_v55, 0  ;;  %v227_v58 = vsel %vm181_vm0, %v180_v52, 0.0  ;;  %v650_v63 = vsel %vm181_vm0, %v1439_v60, 0  ;;  %s1294_s11 = sshll.u32 %s915_s10, 2  ;;  %p1592_p7 = por %p1591_p6, %p1590_p5 }
  0x32   : > { %v224_v59 = vsel %vm181_vm0, %v179_v53, 0.0  ;;  %1360 = vmatpush3.bf16.xpose.msra.mxu1 %v647_v57  ;;  %s1870_s14 = scalar_lea.vmem %s2333_s2, %s1294_s11 }
  0x33   : > { %1390 = vmatprep.subr.msk.bf16.mxu1 %vm181_vm0, %v1439_v60  ;;  %v1441_v0 = vld [vmem:[%s1870_s14] sm:$0xff]   ;;  %p1593_p8 = pnand %p1592_p7, %p1586_p4 }
  0x34   : > { %198 = vadd.xlane.f32.xlu1 %v197_v23  ;;  %195 = vadd.xlane.f32.xlu0 %v194_v24 }
  0x36   : > { %1338 = vmatpush3.bf16.xpose.msra.mxu0 %v378_v43 }
  0x37   : > { %1387 = vmatprep.subr.msk.bf16.mxu0 %vm181_vm0, %v1437_v54 }
  0x38   : > { %204 = vadd.xlane.f32.xlu1 %v203_v30  ;;  %201 = vadd.xlane.f32.xlu0 %v200_v31 }
  0x3a   : > { %1362 = vmatpush3.bf16.xpose.msra.mxu1 %v650_v63 }
  0x3b   : > { %1391 = vmatprep.subr.msk.bf16.mxu1 %vm181_vm0, %v1441_v0 }
  0x3c   : > { %210 = vadd.xlane.f32.xlu1 %v209_v36  ;;  %207 = vadd.xlane.f32.xlu0 %v206_v37 }
  0x3e   : > { %1340 = vmatpush3.bf16.xpose.msra.mxu0 %v381_v56 }
  0x3f   : > { %1388 = vmatprep.subr.msk.bf16.mxu0 %vm181_vm0, %v1440_v61  ;;  %v1442_v61 = vld [vmem:[%s1870_s14 + $0x8] ss:$0 sps:$4 sm:$0xff]  }
  0x40   : > { %216 = vadd.xlane.f32.xlu1 %v215_v45  ;;  %213 = vadd.xlane.f32.xlu0 %v212_v46 }
  0x44   : > { %222 = vadd.xlane.f32.xlu1 %v221_v50  ;;  %219 = vadd.xlane.f32.xlu0 %v218_v51 }
  0x46   : > { %1342 = vmatpush3.bf16.xpose.msra.mxu0 %v384_v62 }
  0x48   : > { %228 = vadd.xlane.f32.xlu1 %v227_v58  ;;  %225 = vadd.xlane.f32.xlu0 %v224_v59 }
  0xb9   : > { %v190_v1 = vpop.xlane.xlu1 %189  ;;  %v184_v2 = vpop.xlane.xlu0 %183 }
  0xba   : > { %v232_v6 = vmax.f32 %v190_v1, 1e-24  ;;  %v230_v7 = vmax.f32 %v184_v2, 1e-24 }
  0xbc   : > { %1443 = vrsqrt.f32 %v232_v6 }
  0xbd   : > { %1445 = vrsqrt.f32 %v230_v7  ;;  %v193_v8 = vpop.xlane.xlu1 %192  ;;  %v187_v10 = vpop.xlane.xlu0 %186 }
  0xbe   : > { %v233_v13 = vmax.f32 %v193_v8, 1e-24  ;;  %v231_v14 = vmax.f32 %v187_v10, 1e-24 }
  0xc0   : > { %1447 = vrsqrt.f32 %v233_v13 }
  0xc1   : > { %1449 = vrsqrt.f32 %v231_v14  ;;  %v199_v15 = vpop.xlane.xlu1 %198  ;;  %v196_v16 = vpop.xlane.xlu0 %195 }
  0xc2   : > { %v235_v17 = vmax.f32 %v199_v15, 1e-24  ;;  %v234_v18 = vmax.f32 %v196_v16, 1e-24 }
  0xc4   : > { %1451 = vrsqrt.f32 %v235_v17 }
  0xc5   : > { %1453 = vrsqrt.f32 %v234_v18  ;;  %v205_v19 = vpop.xlane.xlu1 %204  ;;  %v202_v20 = vpop.xlane.xlu0 %201 }
  0xc6   : > { %v1444_v23 = vpop.eup %1443  ;;  %v237_v24 = vmax.f32 %v205_v19, 1e-24  ;;  %v236_v25 = vmax.f32 %v202_v20, 1e-24  ;;  %v934_v19 = vsel %vm181_vm0, %v1442_v61, 0 }
  0xc7   : > { %v1446_v26 = vpop.eup %1445  ;;  %v264_v29 = vmul.f32 10.0, %v1444_v23 }
  0xc8   : > { %1455 = vrsqrt.f32 %v237_v24  ;;  %v262_v33 = vmul.f32 10.0, %v1446_v26 }
  0xc9   : > { %1457 = vrsqrt.f32 %v236_v25  ;;  %v211_v30 = vpop.xlane.xlu1 %210  ;;  %v208_v31 = vpop.xlane.xlu0 %207  ;;  %v280_v43 = vmul.f32 %v264_v29, %v1739_v3 }
  0xca   : > { %v1448_v32 = vpop.eup %1447  ;;  %v239_v36 = vmax.f32 %v211_v30, 1e-24  ;;  %v238_v37 = vmax.f32 %v208_v31, 1e-24  ;;  %v278_v52 = vmul.f32 %v262_v33, %v1742_v4 }
  0xcb   : > { %v1450_v38 = vpop.eup %1449  ;;  %v265_v39 = vmul.f32 10.0, %v1448_v32 }
  0xcc   : > { %v263_v41 = vmul.f32 10.0, %v1450_v38  ;;  %1459 = vrsqrt.f32 %v239_v36 }
  0xcd   : > { %v281_v44 = vmul.f32 %v265_v39, %v1745_v5  ;;  %1461 = vrsqrt.f32 %v238_v37  ;;  %v217_v45 = vpop.xlane.xlu1 %216  ;;  %v214_v46 = vpop.xlane.xlu0 %213  ;;  %v931_v5 = vsel %vm181_vm0, %v1441_v0, 0 }
  0xce   : > { %v1452_v47 = vpop.eup %1451  ;;  %v241_v50 = vmax.f32 %v217_v45, 1e-24  ;;  %v240_v51 = vmax.f32 %v214_v46, 1e-24  ;;  %v279_v53 = vmul.f32 %v263_v41, %v1754_v9 }
  0xcf   : > { %v1454_v54 = vpop.eup %1453  ;;  %v267_v55 = vmul.f32 10.0, %v1452_v47  ;;  %v295_v56 = vpack.c.bf16 %v281_v44, %v280_v43 }
  0xd0   : > { %v266_v57 = vmul.f32 10.0, %v1454_v54  ;;  %1463 = vrsqrt.f32 %v241_v50  ;;  %v294_v58 = vpack.c.bf16 %v279_v53, %v278_v52 }
  0xd1   : > { %v283_v3 = vmul.f32 %v267_v55, %v1759_v11  ;;  %1465 = vrsqrt.f32 %v240_v51  ;;  %v223_v59 = vpop.xlane.xlu1 %222  ;;  %v220_v60 = vpop.xlane.xlu0 %219 }
  0xd2   : > { %v1456_v62 = vpop.eup %1455  ;;  %v282_v63 = vmul.f32 %v266_v57, %v1762_v12  ;;  %1343 = vmatprep.mubr.msk.bf16.mxu0 %vm181_vm0, %v294_v58  ;;  %1363 = vmatprep.mubr.msk.bf16.mxu1 %vm181_vm0, %v294_v58  ;;  %v243_v4 = vmax.f32 %v223_v59, 1e-24  ;;  %v242_v9 = vmax.f32 %v220_v60, 1e-24 }
  0xd3   : > { %v1458_v1 = vpop.eup %1457  ;;  %v269_v2 = vmul.f32 10.0, %v1456_v62  ;;  %1344 = vmatmul.mubr.msk.bf16.vlgmr.msra.gmra.mrb[0].mxu0 %vm181_vm0, %v295_v56  ;;  %1364 = vmatmul.mubr.msk.bf16.vlgmr.msra.gmra.mrb[0].mxu1 %vm181_vm0, %v295_v56 }
  0xd4   : > { %v268_v11 = vmul.f32 10.0, %v1458_v1  ;;  %1372 = vmatpush3.bf16.xpose.msra.mxu1 %v931_v5  ;;  %1467 = vrsqrt.f32 %v243_v4  ;;  %v296_v0 = vpack.c.bf16 %v283_v3, %v282_v63 }
  0xd5   : > { %v285_v6 = vmul.f32 %v269_v2, %v1777_v21  ;;  %1469 = vrsqrt.f32 %v242_v9  ;;  %v229_v12 = vpop.xlane.xlu1 %228  ;;  %v226_v7 = vpop.xlane.xlu0 %225  ;;  %1392 = vmatprep.subr.msk.bf16.mxu1 %vm181_vm0, %v1442_v61 }
  0xd6   : > { %v1460_v8 = vpop.eup %1459  ;;  %v284_v10 = vmul.f32 %v268_v11, %v1780_v22  ;;  %1347 = vmatprep.mubr.msk.bf16.mxu0 %vm181_vm0, %v296_v0  ;;  %1367 = vmatprep.mubr.msk.bf16.mxu1 %vm181_vm0, %v296_v0  ;;  %v245_v13 = vmax.f32 %v229_v12, 1e-24  ;;  %v244_v14 = vmax.f32 %v226_v7, 1e-24 }
  0xd7   : > { %v1462_v15 = vpop.eup %1461  ;;  %v271_v16 = vmul.f32 10.0, %v1460_v8 }
  0xd8   : > { %v270_v17 = vmul.f32 10.0, %v1462_v15  ;;  %1471 = vrsqrt.f32 %v245_v13  ;;  %v297_v18 = vpack.c.bf16 %v285_v6, %v284_v10 }
  0xd9   : > { %v287_v21 = vmul.f32 %v271_v16, %v1790_v27  ;;  %1473 = vrsqrt.f32 %v244_v14 }
  0xda   : > { %v1464_v20 = vpop.eup %1463  ;;  %v286_v23 = vmul.f32 %v270_v17, %v1793_v28 }
  0xdb   : > { %v1466_v22 = vpop.eup %1465  ;;  %v273_v24 = vmul.f32 10.0, %v1464_v20  ;;  %1348 = vmatmul.mubr.msk.bf16.gmra.mrb[4].mxu0 %vm181_vm0, %v297_v18  ;;  %1368 = vmatmul.mubr.msk.bf16.gmra.mrb[4].mxu1 %vm181_vm0, %v297_v18 }
  0xdc   : > { %v272_v25 = vmul.f32 10.0, %v1466_v22  ;;  %1374 = vmatpush3.bf16.xpose.msra.mxu1 %v934_v19  ;;  %v298_v26 = vpack.c.bf16 %v287_v21, %v286_v23 }
  0xdd   : > { %v289_v29 = vmul.f32 %v273_v24, %v1804_v34 }
  0xde   : > { %v1468_v30 = vpop.eup %1467  ;;  %v288_v27 = vmul.f32 %v272_v25, %v1807_v35  ;;  %1351 = vmatprep.mubr.msk.bf16.mxu0 %vm181_vm0, %v298_v26  ;;  %1375 = vmatprep.mubr.msk.bf16.mxu1 %vm181_vm0, %v298_v26 }
  0xdf   : > { %v1470_v31 = vpop.eup %1469  ;;  %v275_v28 = vmul.f32 10.0, %v1468_v30 }
  0xe0   : > { %v274_v32 = vmul.f32 10.0, %v1470_v31  ;;  %v299_v33 = vpack.c.bf16 %v289_v29, %v288_v27 }
  0xe1   : > { %v291_v36 = vmul.f32 %v275_v28, %v1818_v40 }
  0xe2   : > { %v1472_v37 = vpop.eup %1471  ;;  %v290_v38 = vmul.f32 %v274_v32, %v1824_v42 }
  0xe3   : > { %v1474_v39 = vpop.eup %1473  ;;  %v277_v41 = vmul.f32 10.0, %v1472_v37  ;;  %1352 = vmatmul.mubr.msk.bf16.gmra.mrb[8].mxu0 %vm181_vm0, %v299_v33  ;;  %1376 = vmatmul.mubr.msk.bf16.vlgmr.msra.gmra.mrb[8].mxu1 %vm181_vm0, %v299_v33 }
  0xe4   : > { %v276_v34 = vmul.f32 10.0, %v1474_v39  ;;  %v300_v35 = vpack.c.bf16 %v291_v36, %v290_v38 }
  0xe5   : > { %v293_v43 = vmul.f32 %v277_v41, %v1835_v48 }
  0xe6   : > { %v292_v44 = vmul.f32 %v276_v34, %v1838_v49  ;;  %1355 = vmatprep.mubr.msk.bf16.mxu0 %vm181_vm0, %v300_v35  ;;  %1379 = vmatprep.mubr.msk.bf16.mxu1 %vm181_vm0, %v300_v35 }
  0xe8   : > { %v301_v40 = vpack.c.bf16 %v293_v43, %v292_v44 }
  0xeb   : > { %1356 = vmatmul.mubr.msk.bf16.gmra.mrb[12].mxu0 %vm181_vm0, %v301_v40  ;;  %1380 = vmatmul.mubr.msk.bf16.gmra.mrb[12].mxu1 %vm181_vm0, %v301_v40  ;;  %vm1182_vm0 = vcmask 982912  }
 0x1a6   : > { %v1910_v42 = vpop.f32.mrb[0].mxu0  ;;  %v1912_v45 = vpop.f32.mrb[0].mxu1 }
 0x1a7   : > { %v1914_v46 = vpop.f32.mrb[1].mxu0  ;;  %v1916_v47 = vpop.f32.mrb[1].mxu1  ;;  %v490_v48 = vsel %vm483_vm1, %v1910_v42, -inf }
 0x1a8   : > { %v1920_v49 = vpop.f32.mrb[2].mxu1  ;;  %491 = vmax.xlane.f32.xlu0 %v490_v48  ;;  %v1922_v50 = vpop.f32.mrb[2].mxu0  ;;  %v484_v54 = vsel %vm483_vm1, %v1914_v46, -inf }
 0x1a9   : > { %v1924_v51 = vpop.f32.mrb[3].mxu0  ;;  %v1926_v52 = vpop.f32.mrb[3].mxu1  ;;  %v493_v53 = vsel %vm483_vm1, %v1922_v50, -inf }
 0x1aa   : > { %494 = vmax.xlane.f32.xlu1 %v493_v53  ;;  %v487_v55 = vsel %vm483_vm1, %v1924_v51, -inf }
 0x1ac   : > { %485 = vmax.xlane.f32.xlu0 %v484_v54 }
 0x1ae   : > { %488 = vmax.xlane.f32.xlu1 %v487_v55  ;;  %v1934_v56 = vpop.f32.mrb[4].mxu0  ;;  %v1936_v57 = vpop.f32.mrb[4].mxu1 }
 0x1af   : > { %v1938_v58 = vpop.f32.mrb[5].mxu0  ;;  %v1940_v3 = vpop.f32.mrb[5].mxu1  ;;  %v502_v62 = vsel %vm483_vm1, %v1934_v56, -inf }
 0x1b0   : > { %v1942_v5 = vpop.f32.mrb[6].mxu0  ;;  %v1944_v59 = vpop.f32.mrb[6].mxu1  ;;  %v496_v63 = vsel %vm483_vm1, %v1938_v58, -inf }
 0x1b1   : > { %v1946_v60 = vpop.f32.mrb[7].mxu0  ;;  %v1948_v61 = vpop.f32.mrb[7].mxu1  ;;  %v505_v20 = vsel %vm483_vm1, %v1942_v5, -inf }
 0x1b2   : > { %503 = vmax.xlane.f32.xlu1 %v502_v62  ;;  %v499_v8 = vsel %vm483_vm1, %v1946_v60, -inf }
 0x1b6   : > { %497 = vmax.xlane.f32.xlu1 %v496_v63  ;;  %v1954_v4 = vpop.f32.mrb[8].mxu0  ;;  %v1956_v9 = vpop.f32.mrb[8].mxu1 }
 0x1b7   : > { %v1958_v1 = vpop.f32.mrb[9].mxu0  ;;  %v1960_v2 = vpop.f32.mrb[9].mxu1  ;;  %v514_v11 = vsel %vm483_vm1, %v1954_v4, -inf }
 0x1b8   : > { %v1964_v0 = vpop.f32.mrb[10].mxu1  ;;  %515 = vmax.xlane.f32.xlu0 %v514_v11  ;;  %v1966_v6 = vpop.f32.mrb[10].mxu0  ;;  %v508_v13 = vsel %vm483_vm1, %v1958_v1, -inf }
 0x1b9   : > { %v1968_v12 = vpop.f32.mrb[11].mxu0  ;;  %v1970_v7 = vpop.f32.mrb[11].mxu1  ;;  %v517_v10 = vsel %vm483_vm1, %v1966_v6, -inf }
 0x1ba   : > { %500 = vmax.xlane.f32.xlu1 %v499_v8  ;;  %v511_v16 = vsel %vm483_vm1, %v1968_v12, -inf }
 0x1bc   : > { %518 = vmax.xlane.f32.xlu0 %v517_v10 }
 0x1be   : > { %509 = vmax.xlane.f32.xlu1 %v508_v13  ;;  %v1978_v14 = vpop.f32.mrb[12].mxu0  ;;  %v1980_v15 = vpop.f32.mrb[12].mxu1 }
 0x1bf   : > { %v1984_v17 = vpop.f32.mrb[13].mxu0  ;;  %v1986_v18 = vpop.f32.mrb[13].mxu1  ;;  %v526_v29 = vsel %vm483_vm1, %v1978_v14, -inf }
 0x1c0   : > { %512 = vmax.xlane.f32.xlu0 %v511_v16  ;;  %v1988_v21 = vpop.f32.mrb[14].mxu1  ;;  %v1990_v19 = vpop.f32.mrb[14].mxu0  ;;  %v520_v23 = vsel %vm483_vm1, %v1984_v17, -inf }
 0x1c1   : > { %v1996_v22 = vpop.f32.mrb[15].mxu0  ;;  %v1998_v24 = vpop.f32.mrb[15].mxu1  ;;  %v529_v25 = vsel %vm483_vm1, %v1990_v19, -inf }
 0x1c2   : > { %506 = vmax.xlane.f32.xlu1 %v505_v20  ;;  %v523_v26 = vsel %vm483_vm1, %v1996_v22, -inf }
 0x1c4   : > { %521 = vmax.xlane.f32.xlu0 %v520_v23 }
 0x1c6   : > { %530 = vmax.xlane.f32.xlu1 %v529_v25 }
 0x1c8   : > { %524 = vmax.xlane.f32.xlu0 %v523_v26 }
 0x1cc   : > { %527 = vmax.xlane.f32.xlu0 %v526_v29 }
 0x235   : > { %v492_v30 = vpop.xlane.xlu0 %491 }
 0x236   : > { %v534_v27 = vsub.f32 %v1910_v42, %v492_v30  ;;  %v2008_v31 = vsub.f32 %v1912_v45, %v492_v30 }
 0x237   : > { %v495_v28 = vpop.xlane.xlu1 %494 }
 0x238   : > { %v552_v32 = vmul.f32 1.442695, %v534_v27  ;;  %v729_v33 = vmul.f32 1.442695, %v2008_v31  ;;  %v535_v41 = vsub.f32 %v1922_v50, %v495_v28 }
 0x239   : > { %v486_v36 = vpop.xlane.xlu0 %485 }
 0x23a   : > { %1475 = vpow2.f32 %v552_v32  ;;  %v532_v37 = vsub.f32 %v1914_v46, %v486_v36  ;;  %v2013_v38 = vsub.f32 %v1916_v47, %v486_v36  ;;  %v554_v46 = vmul.f32 1.442695, %v535_v41 }
 0x23b   : > { %1477 = vpow2.f32 %v729_v33  ;;  %v489_v39 = vpop.xlane.xlu1 %488  ;;  %v2023_v47 = vsub.f32 %v1920_v49, %v495_v28 }
 0x23c   : > { %v548_v34 = vmul.f32 1.442695, %v532_v37  ;;  %v533_v35 = vsub.f32 %v1924_v51, %v489_v39  ;;  %v2018_v43 = vsub.f32 %v1926_v52, %v489_v39  ;;  %v725_v44 = vmul.f32 1.442695, %v2013_v38 }
 0x23d   : > { %v731_v52 = vmul.f32 1.442695, %v2023_v47 }
 0x23e   : > { %1479 = vpow2.f32 %v548_v34  ;;  %v550_v40 = vmul.f32 1.442695, %v533_v35  ;;  %v727_v42 = vmul.f32 1.442695, %v2018_v43 }
 0x23f   : > { %1481 = vpow2.f32 %v725_v44  ;;  %v504_v45 = vpop.xlane.xlu1 %503 }
 0x240   : > { %1483 = vpow2.f32 %v550_v40  ;;  %v538_v48 = vsub.f32 %v1934_v56, %v504_v45  ;;  %v2035_v56 = vsub.f32 %v1936_v57, %v504_v45 }
 0x241   : > { %1485 = vpow2.f32 %v727_v42 }
 0x242   : > { %1487 = vpow2.f32 %v554_v46  ;;  %v560_v63 = vmul.f32 1.442695, %v538_v48  ;;  %v737_v57 = vmul.f32 1.442695, %v2035_v56 }
 0x243   : > { %v498_v50 = vpop.xlane.xlu1 %497  ;;  %1489 = vpow2.f32 %v731_v52 }
 0x244   : > { %v1476_v51 = vpop.eup %1475  ;;  %v536_v25 = vsub.f32 %v1938_v58, %v498_v50  ;;  %v2060_v39 = vsub.f32 %v1940_v3, %v498_v50 }
 0x245   : > { %v2027_v53 = vpop.eup %1477  ;;  %v516_v54 = vpop.xlane.xlu0 %515  ;;  %v586_v55 = vsel %vm483_vm1, %v1476_v51, 0.0 }
 0x246   : > { %v542_v62 = vsub.f32 %v1954_v4, %v516_v54  ;;  %v2032_v49 = vsub.f32 %v1956_v9, %v516_v54  ;;  %587 = vadd.xlane.f32.xlu0 %v586_v55  ;;  %v748_v11 = vsel %vm741_vm2, %v2027_v53, 0.0  ;;  %v556_v37 = vmul.f32 1.442695, %v536_v25 }
 0x247   : > { %v2039_v8 = vpop.xlane.xlu1 %500  ;;  %749 = vadd.xlane.f32.xlu1 %v748_v11  ;;  %v733_v3 = vmul.f32 1.442695, %v2060_v39 }
 0x248   : > { %v1480_v10 = vpop.eup %1479  ;;  %v568_v13 = vmul.f32 1.442695, %v542_v62  ;;  %v1013_v16 = vmul.f32 1.442695, %v2032_v49 }
 0x249   : > { %v2042_v4 = vpop.eup %1481  ;;  %v519_v9 = vpop.xlane.xlu0 %518  ;;  %v580_v20 = vsel %vm483_vm1, %v1480_v10, 0.0 }
 0x24a   : > { %v1484_v23 = vpop.eup %1483  ;;  %1491 = vpow2.f32 %v568_v13  ;;  %581 = vadd.xlane.f32.xlu0 %v580_v20  ;;  %v543_v27 = vsub.f32 %v1966_v6, %v519_v9  ;;  %v742_v33 = vsel %vm741_vm2, %v2042_v4, 0.0 }
 0x24b   : > { %1493 = vpow2.f32 %v560_v63  ;;  %v2047_v26 = vpop.xlane.xlu1 %509  ;;  %v583_v29 = vsel %vm483_vm1, %v1484_v23, 0.0  ;;  %v2050_v30 = vpop.eup %1485 }
 0x24c   : > { %1495 = vpow2.f32 %v1013_v16  ;;  %v540_v28 = vsub.f32 %v1958_v1, %v2047_v26  ;;  %584 = vadd.xlane.f32.xlu1 %v583_v29  ;;  %v1488_v36 = vpop.eup %1487  ;;  %v745_v6 = vsel %vm741_vm2, %v2050_v30, 0.0  ;;  %v570_v41 = vmul.f32 1.442695, %v543_v27 }
 0x24d   : > { %v2055_v32 = vpop.xlane.xlu0 %512  ;;  %1497 = vpow2.f32 %v737_v57  ;;  %v2065_v1 = vsub.f32 %v1964_v0, %v519_v9  ;;  %v589_v44 = vsel %vm483_vm1, %v1488_v36, 0.0  ;;  %v2070_v40 = vpop.eup %1489 }
 0x24e   : > { %v564_v58 = vmul.f32 1.442695, %v540_v28  ;;  %743 = vadd.xlane.f32.xlu0 %v742_v33  ;;  %v2075_v42 = vsub.f32 %v1970_v7, %v2055_v32  ;;  %v751_v51 = vsel %vm741_vm2, %v2070_v40, 0.0  ;;  %v537_v7 = vsub.f32 %v1946_v60, %v2039_v8 }
 0x24f   : > { %v2067_v34 = vpop.xlane.xlu1 %506  ;;  %v1015_v0 = vmul.f32 1.442695, %v2065_v1  ;;  %v2098_v60 = vsub.f32 %v1948_v61, %v2039_v8  ;;  %v2109_v61 = vsub.f32 %v1960_v2, %v2047_v26  ;;  %v541_v2 = vsub.f32 %v1968_v12, %v2055_v32 }
 0x250   : > { %1499 = vpow2.f32 %v564_v58  ;;  %746 = vadd.xlane.f32.xlu1 %v745_v6  ;;  %v539_v46 = vsub.f32 %v1942_v5, %v2067_v34  ;;  %v1011_v55 = vmul.f32 1.442695, %v2075_v42  ;;  %v558_v9 = vmul.f32 1.442695, %v537_v7 }
 0x251   : > { %v522_v35 = vpop.xlane.xlu0 %521  ;;  %1501 = vpow2.f32 %v556_v37  ;;  %v735_v27 = vmul.f32 1.442695, %v2098_v60  ;;  %v1009_v37 = vmul.f32 1.442695, %v2109_v61  ;;  %v2133_v12 = vsub.f32 %v1944_v59, %v2067_v34 }
 0x252   : > { %590 = vadd.xlane.f32.xlu0 %v589_v44  ;;  %1503 = vpow2.f32 %v570_v41  ;;  %v562_v5 = vmul.f32 1.442695, %v539_v46  ;;  %v544_v8 = vsub.f32 %v1984_v17, %v522_v35  ;;  %v2123_v26 = vsub.f32 %v1986_v18, %v522_v35 }
 0x253   : > { %1505 = vpow2.f32 %v733_v3  ;;  %v531_v32 = vpop.xlane.xlu1 %530  ;;  %v739_v59 = vmul.f32 1.442695, %v2133_v12 }
 0x254   : > { %v1492_v45 = vpop.eup %1491  ;;  %1507 = vpow2.f32 %v1015_v0  ;;  %v572_v17 = vmul.f32 1.442695, %v544_v8  ;;  %v1017_v18 = vmul.f32 1.442695, %v2123_v26  ;;  %v547_v34 = vsub.f32 %v1990_v19, %v531_v32 }
 0x255   : > { %v1494_v48 = vpop.eup %1493  ;;  %v2080_v50 = vpop.xlane.xlu0 %524  ;;  %v610_v52 = vsel %vm483_vm1, %v1492_v45, 0.0  ;;  %1509 = vpow2.f32 %v1011_v55  ;;  %v566_v45 = vmul.f32 1.442695, %v541_v2  ;;  %v2154_v19 = vsub.f32 %v1988_v21, %v531_v32 }
 0x256   : > { %v2085_v54 = vpop.eup %1495  ;;  %752 = vadd.xlane.f32.xlu0 %v751_v51  ;;  %611 = vadd.xlane.f32.xlu1 %v610_v52  ;;  %v598_v11 = vsel %vm483_vm1, %v1494_v48, 0.0  ;;  %1511 = vpow2.f32 %v562_v5  ;;  %v545_v35 = vsub.f32 %v1996_v22, %v2080_v50  ;;  %v2145_v7 = vsub.f32 %v1998_v24, %v2080_v50 }
 0x257   : > { %v2090_v62 = vpop.eup %1497  ;;  %v1031_v10 = vsel %vm741_vm2, %v2085_v54, 0.0  ;;  %1513 = vpow2.f32 %v558_v9  ;;  %v1023_v9 = vmul.f32 1.442695, %v2154_v19 }
 0x258   : > { %v760_v25 = vsel %vm741_vm2, %v2090_v62, 0.0  ;;  %v574_v52 = vmul.f32 1.442695, %v545_v35 }
 0x259   : > { %v528_v63 = vpop.xlane.xlu0 %527 }
 0x25a   : > { %v1500_v13 = vpop.eup %1499  ;;  %v546_v16 = vsub.f32 %v1978_v14, %v528_v63  ;;  %599 = vadd.xlane.f32.xlu0 %v598_v11  ;;  %1032 = vadd.xlane.f32.xlu1 %v1031_v10  ;;  %v2101_v23 = vsub.f32 %v1980_v15, %v528_v63  ;;  %v578_v11 = vmul.f32 1.442695, %v547_v34  ;;  %v1019_v10 = vmul.f32 1.442695, %v2145_v7 }
 0x25b   : > { %v1502_v57 = vpop.eup %1501  ;;  %v604_v29 = vsel %vm483_vm1, %v1500_v13, 0.0 }
 0x25c   : > { %v576_v20 = vmul.f32 1.442695, %v546_v16  ;;  %v1504_v14 = vpop.eup %1503  ;;  %v1021_v15 = vmul.f32 1.442695, %v2101_v23  ;;  %v592_v33 = vsel %vm483_vm1, %v1502_v57, 0.0 }
 0x25d   : > { %v2113_v28 = vpop.eup %1505  ;;  %v613_v36 = vsel %vm483_vm1, %v1504_v14, 0.0 }
 0x25e   : > { %761 = vadd.xlane.f32.xlu0 %v760_v25  ;;  %605 = vadd.xlane.f32.xlu1 %v604_v29  ;;  %1515 = vpow2.f32 %v576_v20  ;;  %v2117_v58 = vpop.eup %1507  ;;  %v754_v41 = vsel %vm741_vm2, %v2113_v28, 0.0 }
 0x25f   : > { %1517 = vpow2.f32 %v735_v27  ;;  %v2125_v6 = vpop.eup %1509  ;;  %v1034_v44 = vsel %vm741_vm2, %v2117_v58, 0.0 }
 0x260   : > { %1519 = vpow2.f32 %v1021_v15  ;;  %v1512_v3 = vpop.eup %1511  ;;  %v1028_v48 = vsel %vm741_vm2, %v2125_v6, 0.0 }
 0x261   : > { %1521 = vpow2.f32 %v1009_v37  ;;  %v1514_v0 = vpop.eup %1513  ;;  %v601_v46 = vsel %vm483_vm1, %v1512_v3, 0.0 }
 0x262   : > { %593 = vadd.xlane.f32.xlu0 %v592_v33  ;;  %614 = vadd.xlane.f32.xlu1 %v613_v36  ;;  %1523 = vpow2.f32 %v572_v17  ;;  %v595_v55 = vsel %vm483_vm1, %v1514_v0, 0.0 }
 0x263   : > { %1525 = vpow2.f32 %v566_v45 }
 0x264   : > { %1527 = vpow2.f32 %v1017_v18 }
 0x265   : > { %1529 = vpow2.f32 %v739_v59 }
 0x266   : > { %755 = vadd.xlane.f32.xlu0 %v754_v41  ;;  %1035 = vadd.xlane.f32.xlu1 %v1034_v44  ;;  %1531 = vpow2.f32 %v574_v52 }
 0x267   : > { %1533 = vpow2.f32 %v578_v11 }
 0x268   : > { %v1516_v51 = vpop.eup %1515  ;;  %1535 = vpow2.f32 %v1019_v10 }
 0x269   : > { %v2147_v22 = vpop.eup %1517  ;;  %v622_v5 = vsel %vm483_vm1, %v1516_v51, 0.0  ;;  %1537 = vpow2.f32 %v1023_v9 }
 0x26a   : > { %602 = vadd.xlane.f32.xlu0 %v601_v46  ;;  %1029 = vadd.xlane.f32.xlu1 %v1028_v48  ;;  %v2151_v63 = vpop.eup %1519  ;;  %v757_v50 = vsel %vm741_vm2, %v2147_v22, 0.0 }
 0x26b   : > { %v2157_v24 = vpop.eup %1521  ;;  %v1043_v13 = vsel %vm741_vm2, %v2151_v63, 0.0 }
 0x26c   : > { %v1524_v16 = vpop.eup %1523  ;;  %v1025_v20 = vsel %vm741_vm2, %v2157_v24, 0.0 }
 0x26d   : > { %v1526_v21 = vpop.eup %1525  ;;  %v616_v57 = vsel %vm483_vm1, %v1524_v16, 0.0 }
 0x26e   : > { %596 = vadd.xlane.f32.xlu0 %v595_v55  ;;  %623 = vadd.xlane.f32.xlu1 %v622_v5  ;;  %v2167_v25 = vpop.eup %1527  ;;  %v607_v14 = vsel %vm483_vm1, %v1526_v21, 0.0 }
 0x26f   : > { %v2169_v29 = vpop.eup %1529  ;;  %v1037_v27 = vsel %vm741_vm2, %v2167_v25, 0.0 }
 0x270   : > { %v1532_v8 = vpop.eup %1531  ;;  %v763_v33 = vsel %vm741_vm2, %v2169_v29, 0.0 }
 0x271   : > { %v1534_v15 = vpop.eup %1533  ;;  %v619_v36 = vsel %vm483_vm1, %v1532_v8, 0.0 }
 0x272   : > { %758 = vadd.xlane.f32.xlu0 %v757_v50  ;;  %1044 = vadd.xlane.f32.xlu1 %v1043_v13  ;;  %v2177_v37 = vpop.eup %1535  ;;  %v625_v2 = vsel %vm483_vm1, %v1534_v15, 0.0  ;;  %vm1189_vm1 = vcmask 1048512  }
 0x273   : > { %v1040_v17 = vsel %vm741_vm2, %v2177_v37, 0.0  ;;  %v2182_v41 = vpop.eup %1537 }
 0x274   : > { %v1046_v44 = vsel %vm741_vm2, %v2182_v41, 0.0 }
 0x276   : > { %1026 = vadd.xlane.f32.xlu0 %v1025_v20  ;;  %617 = vadd.xlane.f32.xlu1 %v616_v57 }
 0x27a   : > { %608 = vadd.xlane.f32.xlu0 %v607_v14  ;;  %1038 = vadd.xlane.f32.xlu1 %v1037_v27 }
 0x27e   : > { %764 = vadd.xlane.f32.xlu0 %v763_v33  ;;  %620 = vadd.xlane.f32.xlu1 %v619_v36 }
 0x282   : > { %626 = vadd.xlane.f32.xlu0 %v625_v2  ;;  %1041 = vadd.xlane.f32.xlu1 %v1040_v17 }
 0x286   : > { %1047 = vadd.xlane.f32.xlu1 %v1046_v44 }
 0x2d3   : > { %v588_v3 = vpop.xlane.xlu0 %587 }
 0x2d4   : > { %v750_v45 = vpop.xlane.xlu1 %749 }
 0x2d5   : > { %v768_v18 = vsub.f32 %v588_v3, %v750_v45 }
 0x2d7   : > { %v582_v32 = vpop.xlane.xlu0 %581  ;;  %v776_v35 = vmax.f32 %v768_v18, 0.0 }
 0x2d9   : > { %v585_v0 = vpop.xlane.xlu1 %584  ;;  %v784_v46 = vadd.f32 %v2027_v53, %v776_v35 }
 0x2db   : > { %v744_v48 = vpop.xlane.xlu0 %743  ;;  %1539 = vlog2.f32 %v784_v46 }
 0x2dc   : > { %v766_v51 = vsub.f32 %v582_v32, %v744_v48 }
 0x2dd   : > { %v747_v59 = vpop.xlane.xlu1 %746 }
 0x2de   : > { %v774_v34 = vmax.f32 %v766_v51, 0.0  ;;  %v767_v52 = vsub.f32 %v585_v0, %v747_v59 }
 0x2df   : > { %v591_v55 = vpop.xlane.xlu0 %590 }
 0x2e0   : > { %v782_v5 = vadd.f32 %v2042_v4, %v774_v34  ;;  %v775_v11 = vmax.f32 %v767_v52, 0.0 }
 0x2e2   : > { %1541 = vlog2.f32 %v782_v5  ;;  %v783_v13 = vadd.f32 %v2050_v30, %v775_v11 }
 0x2e3   : > { %v612_v10 = vpop.xlane.xlu1 %611  ;;  %v753_v50 = vpop.xlane.xlu0 %752 }
 0x2e4   : > { %v769_v16 = vsub.f32 %v591_v55, %v753_v50  ;;  %1543 = vlog2.f32 %v783_v13 }
 0x2e5   : > { %v1540_v9 = vpop.eup %1539 }
 0x2e6   : > { %v777_v21 = vmax.f32 %v769_v16, 0.0  ;;  %v795_v57 = vmul.f32 0.6931472, %v1540_v9 }
 0x2e7   : > { %v1033_v20 = vpop.xlane.xlu1 %1032  ;;  %v600_v53 = vpop.xlane.xlu0 %599 }
 0x2e8   : > { %v785_v14 = vadd.f32 %v2070_v40, %v777_v21  ;;  %v1051_v27 = vsub.f32 %v612_v10, %v1033_v20  ;;  %v808_v8 = vsub.f32 %v2008_v31, %v795_v57 }
 0x2ea   : > { %1545 = vlog2.f32 %v785_v14  ;;  %v1059_v4 = vmax.f32 %v1051_v27, 0.0  ;;  %v820_v15 = vsel %vm741_vm2, %v808_v8, 0.0 }
 0x2eb   : > { %v606_v33 = vpop.xlane.xlu1 %605  ;;  %v762_v36 = vpop.xlane.xlu0 %761  ;;  %821 = vadd.xlane.f32.xlu0 %v820_v15 }
 0x2ec   : > { %v1542_v2 = vpop.eup %1541  ;;  %v1067_v30 = vadd.f32 %v2085_v54, %v1059_v4  ;;  %v772_v17 = vsub.f32 %v600_v53, %v762_v36 }
 0x2ed   : > { %v791_v44 = vmul.f32 0.6931472, %v1542_v2 }
 0x2ee   : > { %1547 = vlog2.f32 %v1067_v30  ;;  %v780_v3 = vmax.f32 %v772_v17, 0.0  ;;  %v1544_v35 = vpop.eup %1543 }
 0x2ef   : > { %v615_v45 = vpop.xlane.xlu1 %614  ;;  %v594_v18 = vpop.xlane.xlu0 %593  ;;  %v806_v40 = vsub.f32 %v2013_v38, %v791_v44  ;;  %v793_v34 = vmul.f32 0.6931472, %v1544_v35 }
 0x2f0   : > { %v788_v31 = vadd.f32 %v2090_v62, %v780_v3 }
 0x2f1   : > { %v814_v32 = vsel %vm741_vm2, %v806_v40, 0.0  ;;  %v807_v9 = vsub.f32 %v2018_v43, %v793_v34 }
 0x2f2   : > { %1549 = vlog2.f32 %v788_v31  ;;  %815 = vadd.xlane.f32.xlu0 %v814_v32 }
 0x2f3   : > { %v1036_v0 = vpop.xlane.xlu1 %1035  ;;  %v756_v46 = vpop.xlane.xlu0 %755  ;;  %v817_v14 = vsel %vm741_vm2, %v807_v9, 0.0 }
 0x2f4   : > { %v1546_v48 = vpop.eup %1545  ;;  %v1052_v54 = vsub.f32 %v615_v45, %v1036_v0  ;;  %v770_v51 = vsub.f32 %v594_v18, %v756_v46 }
 0x2f5   : > { %v797_v59 = vmul.f32 0.6931472, %v1546_v48 }
 0x2f6   : > { %v1060_v52 = vmax.f32 %v1052_v54, 0.0  ;;  %v778_v55 = vmax.f32 %v770_v51, 0.0 }
 0x2f7   : > { %v1030_v5 = vpop.xlane.xlu1 %1029  ;;  %v603_v11 = vpop.xlane.xlu0 %602  ;;  %v809_v38 = vsub.f32 %v2023_v47, %v797_v59 }
 0x2f8   : > { %v1548_v10 = vpop.eup %1547  ;;  %v1068_v62 = vadd.f32 %v2117_v58, %v1060_v52  ;;  %v786_v50 = vadd.f32 %v2113_v28, %v778_v55 }
 0x2f9   : > { %v823_v13 = vsel %vm741_vm2, %v809_v38, 0.0  ;;  %v1078_v16 = vmul.f32 0.6931472, %v1548_v10 }
 0x2fa   : > { %1551 = vlog2.f32 %v1068_v62  ;;  %824 = vadd.xlane.f32.xlu1 %v823_v13 }
 0x2fb   : > { %1553 = vlog2.f32 %v786_v50  ;;  %v624_v21 = vpop.xlane.xlu1 %623  ;;  %v597_v20 = vpop.xlane.xlu0 %596  ;;  %v1091_v53 = vsub.f32 %v2032_v49, %v1078_v16 }
 0x2fc   : > { %v1550_v57 = vpop.eup %1549 }
 0x2fd   : > { %v1103_v47 = vsel %vm741_vm2, %v1091_v53, 0.0  ;;  %v803_v58 = vmul.f32 0.6931472, %v1550_v57 }
 0x2fe   : > { %1104 = vadd.xlane.f32.xlu0 %v1103_v47  ;;  %818 = vadd.xlane.f32.xlu1 %v817_v14 }
 0x2ff   : > { %v1045_v28 = vpop.xlane.xlu1 %1044  ;;  %v759_v27 = vpop.xlane.xlu0 %758  ;;  %v812_v8 = vsub.f32 %v2035_v56, %v803_v58 }
 0x300   : > { %v771_v43 = vsub.f32 %v597_v20, %v759_v27  ;;  %v1055_v48 = vsub.f32 %v624_v21, %v1045_v28 }
 0x301   : > { %v832_v4 = vsel %vm741_vm2, %v812_v8, 0.0 }
 0x302   : > { %v779_v15 = vmax.f32 %v771_v43, 0.0  ;;  %833 = vadd.xlane.f32.xlu1 %v832_v4  ;;  %v1063_v55 = vmax.f32 %v1055_v48, 0.0 }
 0x303   : > { %v618_v36 = vpop.xlane.xlu1 %617  ;;  %v1027_v2 = vpop.xlane.xlu0 %1026 }
 0x304   : > { %v1552_v49 = vpop.eup %1551  ;;  %v787_v30 = vadd.f32 %v2147_v22, %v779_v15  ;;  %v1049_v17 = vsub.f32 %v606_v33, %v1027_v2  ;;  %v1071_v50 = vadd.f32 %v2151_v63, %v1063_v55 }
 0x305   : > { %v1554_v44 = vpop.eup %1553  ;;  %v1080_v3 = vmul.f32 0.6931472, %v1552_v49 }
 0x306   : > { %v1057_v45 = vmax.f32 %v1049_v17, 0.0  ;;  %v799_v18 = vmul.f32 0.6931472, %v1554_v44  ;;  %1555 = vlog2.f32 %v787_v30 }
 0x307   : > { %v1039_v40 = vpop.xlane.xlu1 %1038  ;;  %v609_v31 = vpop.xlane.xlu0 %608  ;;  %v1092_v56 = vsub.f32 %v2065_v1, %v1080_v3 }
 0x308   : > { %v1065_v32 = vadd.f32 %v2157_v24, %v1057_v45  ;;  %v1053_v35 = vsub.f32 %v618_v36, %v1039_v40  ;;  %v1050_v0 = vsub.f32 %v609_v31, %v1030_v5  ;;  %v810_v46 = vsub.f32 %v2060_v39, %v799_v18 }
 0x309   : > { %v1106_v54 = vsel %vm741_vm2, %v1092_v56, 0.0  ;;  %v854_v56 = vlaneseq }
 0x30a   : > { %1557 = vlog2.f32 %v1065_v32  ;;  %v1061_v22 = vmax.f32 %v1053_v35, 0.0  ;;  %v1058_v33 = vmax.f32 %v1050_v0, 0.0  ;;  %1107 = vadd.xlane.f32.xlu0 %v1106_v54  ;;  %v826_v51 = vsel %vm741_vm2, %v810_v46, 0.0 }
 0x30b   : > { %827 = vadd.xlane.f32.xlu1 %v826_v51  ;;  %v621_v59 = vpop.xlane.xlu1 %620  ;;  %v765_v34 = vpop.xlane.xlu0 %764  ;;  %v2234_v35 = vand.u32 127, %v854_v56  ;;  %v2237_v48 = vshrl.u32 %v854_v56, 7 }
 0x30c   : > { %v1069_v1 = vadd.f32 %v2167_v25, %v1061_v22  ;;  %v1066_v24 = vadd.f32 %v2125_v6, %v1058_v33  ;;  %v773_v52 = vsub.f32 %v603_v11, %v765_v34 }
 0x30d   : > { %v860_v0 = vadd.s32 4294967288, %v2234_v35  ;;  %v874_v51 = vadd.s32 4294967272, %v2234_v35 }
 0x30e   : > { %1559 = vlog2.f32 %v1069_v1  ;;  %v781_v39 = vmax.f32 %v773_v52, 0.0  ;;  %v881_v1 = vadd.s32 4294967264, %v2234_v35 }
 0x30f   : > { %1561 = vlog2.f32 %v1066_v24  ;;  %v1042_v5 = vpop.xlane.xlu1 %1041  ;;  %v627_v9 = vpop.xlane.xlu0 %626  ;;  %v863_v54 = vsub.s32 %v860_v0, %v2237_v48  ;;  %v888_v24 = vadd.s32 4294967256, %v2234_v35 }
 0x310   : > { %v789_v38 = vadd.f32 %v2169_v29, %v781_v39  ;;  %v1054_v10 = vsub.f32 %v621_v59, %v1042_v5  ;;  %v1556_v62 = vpop.eup %1555  ;;  %v858_v59 = vsub.s32 %v2234_v35, %v2237_v48 }
 0x311   : > { %v801_v16 = vmul.f32 0.6931472, %v1556_v62  ;;  %v1149_v62 = vadd.s32 4294967216, %v2234_v35 }
 0x312   : > { %1563 = vlog2.f32 %v789_v38  ;;  %v1062_v13 = vmax.f32 %v1054_v10, 0.0  ;;  %v877_v10 = vsub.s32 %v874_v51, %v2237_v48 }
 0x313   : > { %v1048_v21 = vpop.xlane.xlu1 %1047  ;;  %v811_v20 = vsub.f32 %v2098_v60, %v801_v16  ;;  %1565 = vlog2.f32 %v1071_v50  ;;  %v884_v16 = vsub.s32 %v881_v1, %v2237_v48 }
 0x314   : > { %v1558_v25 = vpop.eup %1557  ;;  %v1070_v6 = vadd.f32 %v2177_v37, %v1062_v13  ;;  %v1056_v11 = vsub.f32 %v627_v9, %v1048_v21  ;;  %v895_v13 = vadd.s32 4294967248, %v2234_v35  ;;  %v2252_v21 = vadd.s32 4294967208, %v2234_v35 }
 0x315   : > { %v1074_v53 = vmul.f32 0.6931472, %v1558_v25  ;;  %v829_v29 = vsel %vm741_vm2, %v811_v20, 0.0  ;;  %v891_v25 = vsub.s32 %v888_v24, %v2237_v48 }
 0x316   : > { %1567 = vlog2.f32 %v1070_v6  ;;  %v1064_v57 = vmax.f32 %v1056_v11, 0.0  ;;  %830 = vadd.xlane.f32.xlu1 %v829_v29  ;;  %v1142_v6 = vadd.s32 4294967224, %v2234_v35  ;;  %v1137_v29 = vadd.s32 4294967232, %v2234_v35 }
 0x317   : > { %v1089_v63 = vsub.f32 %v2109_v61, %v1074_v53 }
 0x318   : > { %v1560_v47 = vpop.eup %1559  ;;  %v1072_v14 = vadd.f32 %v2182_v41, %v1064_v57 }
 0x319   : > { %v1562_v58 = vpop.eup %1561  ;;  %v1097_v28 = vsel %vm741_vm2, %v1089_v63, 0.0  ;;  %v1082_v27 = vmul.f32 0.6931472, %v1560_v47  ;;  %v1152_v47 = vsub.s32 %v1149_v62, %v2237_v48 }
 0x31a   : > { %1569 = vlog2.f32 %v1072_v14  ;;  %v1076_v37 = vmul.f32 0.6931472, %v1562_v58  ;;  %1098 = vadd.xlane.f32.xlu1 %v1097_v28  ;;  %v898_v58 = vsub.s32 %v895_v13, %v2237_v48  ;;  %v902_v28 = vadd.s32 4294967240, %v2234_v35 }
 0x31b   : > { %v1093_v15 = vsub.f32 %v2123_v26, %v1082_v27 }
 0x31c   : > { %v1564_v60 = vpop.eup %1563  ;;  %v1090_v8 = vsub.f32 %v2075_v42, %v1076_v37 }
 0x31d   : > { %v805_v43 = vmul.f32 0.6931472, %v1564_v60  ;;  %v1566_v36 = vpop.eup %1565  ;;  %v1109_v30 = vsel %vm741_vm2, %v1093_v15, 0.0  ;;  %v1159_v60 = vsub.s32 %v2252_v21, %v2237_v48  ;;  %v1140_v15 = vsub.s32 %v1137_v29, %v2237_v48 }
 0x31e   : > { %v1100_v4 = vsel %vm741_vm2, %v1090_v8, 0.0  ;;  %v1086_v17 = vmul.f32 0.6931472, %v1566_v36  ;;  %v1145_v8 = vsub.s32 %v1142_v6, %v2237_v48 }
 0x31f   : > { %1101 = vadd.xlane.f32.xlu0 %v1100_v4  ;;  %v813_v61 = vsub.f32 %v2133_v12, %v805_v43 }
 0x320   : > { %v1568_v41 = vpop.eup %1567  ;;  %v1095_v26 = vsub.f32 %v2101_v23, %v1086_v17  ;;  %v905_v17 = vsub.s32 %v902_v28, %v2237_v48 }
 0x321   : > { %v835_v2 = vsel %vm741_vm2, %v813_v61, 0.0  ;;  %v1084_v49 = vmul.f32 0.6931472, %v1568_v41 }
 0x322   : > { %836 = vadd.xlane.f32.xlu1 %v835_v2  ;;  %v1115_v40 = vsel %vm741_vm2, %v1095_v26, 0.0 }
 0x323   : > { %1110 = vadd.xlane.f32.xlu0 %v1109_v30  ;;  %v1094_v42 = vsub.f32 %v2145_v7, %v1084_v49  ;;  %v1163_v49 = vadd.s32 4294967200, %v2234_v35 }
 0x324   : > { %v1570_v44 = vpop.eup %1569 }
 0x325   : > { %v1112_v3 = vsel %vm741_vm2, %v1094_v42, 0.0  ;;  %v1088_v45 = vmul.f32 0.6931472, %v1570_v44 }
 0x327   : > { %1113 = vadd.xlane.f32.xlu0 %v1112_v3  ;;  %v1096_v12 = vsub.f32 %v2154_v19, %v1088_v45  ;;  %v867_v19 = vadd.s32 4294967280, %v2234_v35 }
 0x329   : > { %v1118_v18 = vsel %vm741_vm2, %v1096_v12, 0.0  ;;  %v870_v52 = vsub.s32 %v867_v19, %v2237_v48  ;;  %vm1192_vm2 = vcmask 1040896  }
 0x32a   : > { %1119 = vadd.xlane.f32.xlu1 %v1118_v18 }
 0x32b   : > { %1116 = vadd.xlane.f32.xlu0 %v1115_v40 }
 0x378   : > { %v822_v7 = vpop.xlane.xlu0 %821 }
 0x379   : > { %v840_v38 = vmul.f32 -0.05952381, %v822_v7 }
 0x37b   : > { %v871_v63 = vrot.slane %v840_v38, %v870_v52 }
 0x37f   : > { %v816_v23 = vpop.xlane.xlu0 %815 }
 0x380   : > { %v838_v34 = vmul.f32 -0.05952381, %v816_v23  ;;  %v1184_v23 = vadd.s32 4294967176, %v2234_v35 }
 0x382   : > { %v859_v50 = vrot.slane %v838_v34, %v858_v59 }
 0x387   : > { %v825_v31 = vpop.xlane.xlu1 %824 }
 0x388   : > { %v841_v11 = vmul.f32 -0.05952381, %v825_v31  ;;  %v1170_v31 = vadd.s32 4294967192, %v2234_v35 }
 0x38a   : > { %v878_v43 = vrot.slane %v841_v11, %v877_v10  ;;  %v1173_v59 = vsub.s32 %v1170_v31, %v2237_v48 }
 0x38b   : > { %v819_v32 = vpop.xlane.xlu1 %818  ;;  %v1105_v39 = vpop.xlane.xlu0 %1104 }
 0x38c   : > { %v839_v22 = vmul.f32 -0.05952381, %v819_v32  ;;  %v1123_v42 = vmul.f32 -0.05952381, %v1105_v39  ;;  %v1166_v32 = vsub.s32 %v1163_v49, %v2237_v48 }
 0x38e   : > { %v864_v55 = vrot.slane %v839_v22, %v863_v54  ;;  %v1153_v19 = vrot.slane %v1123_v42, %v1152_v47 }
 0x38f   : > { %v834_v46 = vpop.xlane.xlu1 %833 }
 0x390   : > { %v866_v20 = vsel %vm865_vm3, %v864_v55, %v859_v50  ;;  %v844_v41 = vmul.f32 -0.05952381, %v834_v46  ;;  %v1187_v55 = vsub.s32 %v1184_v23, %v2237_v48 }
 0x391   : > { %v873_v37 = vsel %vm872_vm4, %v871_v63, %v866_v20 }
 0x392   : > { %v880_v30 = vsel %vm879_vm5, %v878_v43, %v873_v37  ;;  %v899_v56 = vrot.slane %v844_v41, %v898_v58 }
 0x397   : > { %v1108_v53 = vpop.xlane.xlu0 %1107 }
 0x398   : > { %v828_v33 = vpop.xlane.xlu1 %827  ;;  %v1124_v7 = vmul.f32 -0.05952381, %v1108_v53 }
 0x399   : > { %v842_v9 = vmul.f32 -0.05952381, %v828_v33  ;;  %v1177_v33 = vadd.s32 4294967184, %v2234_v35 }
 0x39a   : > { %v1160_v52 = vrot.slane %v1124_v7, %v1159_v60 }
 0x39b   : > { %v885_v27 = vrot.slane %v842_v9, %v884_v16  ;;  %v1180_v35 = vsub.s32 %v1177_v33, %v2237_v48 }
 0x39d   : > { %v887_v44 = vsel %vm886_vm6, %v885_v27, %v880_v30 }
 0x3a3   : > { %v831_v5 = vpop.xlane.xlu1 %830 }
 0x3a4   : > { %v843_v57 = vmul.f32 -0.05952381, %v831_v5 }
 0x3a6   : > { %v892_v4 = vrot.slane %v843_v57, %v891_v25 }
 0x3a7   : > { %v1099_v14 = vpop.xlane.xlu1 %1098 }
 0x3a8   : > { %v1121_v36 = vmul.f32 -0.05952381, %v1099_v14  ;;  %v894_v26 = vsel %vm893_vm7, %v892_v4, %v887_v44 }
 0x3a9   : > { %v901_v54 = vsel %vm900_vm9, %v899_v56, %v894_v26 }
 0x3aa   : > { %v1141_v12 = vrot.slane %v1121_v36, %v1140_v15 }
 0x3ac   : > { %v1102_v61 = vpop.xlane.xlu0 %1101 }
 0x3ad   : > { %v1122_v2 = vmul.f32 -0.05952381, %v1102_v61 }
 0x3af   : > { %v1146_v3 = vrot.slane %v1122_v2, %v1145_v8  ;;  %v837_v45 = vpop.xlane.xlu1 %836 }
 0x3b0   : > { %v845_v18 = vmul.f32 -0.05952381, %v837_v45  ;;  %v1111_v40 = vpop.xlane.xlu0 %1110 }
 0x3b1   : > { %v1148_v0 = vsel %vm1147_vm8, %v1146_v3, %v1141_v12  ;;  %v1125_v22 = vmul.f32 -0.05952381, %v1111_v40 }
 0x3b2   : > { %v906_v46 = vrot.slane %v845_v18, %v905_v17  ;;  %v1155_v1 = vsel %vm1154_vm10, %v1153_v19, %v1148_v0 }
 0x3b3   : > { %v1167_v39 = vrot.slane %v1125_v22, %v1166_v32  ;;  %v1162_v38 = vsel %vm1161_vm13, %v1160_v52, %v1155_v1 }
 0x3b4   : > { %v908_v51 = vsel %vm907_vm11, %v906_v46, %v901_v54  ;;  %v1114_v34 = vpop.xlane.xlu0 %1113 }
 0x3b5   : > { %v1126_v24 = vmul.f32 -0.05952381, %v1114_v34  ;;  %911 = vst.msk [vmem:[%s142_s16] sm:$0x1] %vm910_vm12, %v908_v51  ;;  %v1169_v9 = vsel %vm1168_vm14, %v1167_v39, %v1162_v38 }
 0x3b7   : > { %v1120_v5 = vpop.xlane.xlu1 %1119  ;;  %v1174_v10 = vrot.slane %v1126_v24, %v1173_v59 }
 0x3b8   : > { %v1128_v62 = vmul.f32 -0.05952381, %v1120_v5  ;;  %v1117_v50 = vpop.xlane.xlu0 %1116 }
 0x3b9   : > { %v1127_v13 = vmul.f32 -0.05952381, %v1117_v50  ;;  %v1176_v25 = vsel %vm1175_vm15, %v1174_v10, %v1169_v9 }
 0x3ba   : > { %v1188_v16 = vrot.slane %v1128_v62, %v1187_v55 }
 0x3bb   : > { %v1181_v21 = vrot.slane %v1127_v13, %v1180_v35 }
 0x3bd   : > { %v1183_v6 = vsel %vm1182_vm0, %v1181_v21, %v1176_v25 }
 0x3be   : > { %v1190_v48 = vsel %vm1189_vm1, %v1188_v16, %v1183_v6 }
 0x3bf   : > { %1193 = vst.msk [vmem:[%s142_s16] sm:$0x1] %vm1192_vm2, %v1190_v48 }
 0x3c0   : > { %1596 = shalt.err (!%p1593_p8)
}
 0x3c1   : > { %s1597_s7 = scalar_lea.hbm %s2287_s29, 16  ;;  %s1601_s10 = scalar_lea.hbm %s2334_s3, 64 }
 0x3c2   : > { %p1598_p9 = scmp.ne.s32.totalorder %s2287_s29, %s1597_s7  ;;  %p1602_p0 = scmp.lt.u32.totalorder %s2287_s29, %s2334_s3 }
 0x3c3   : > { %p1603_p1 = scmp.lt.u32.totalorder %s1601_s10, %s1597_s7  ;;  %p1605_p3 = scmp.lt.u32.totalorder %s1597_s7, %s2287_s29 }
 0x3c4   : > { %p1599_p12 = pnand %p1598_p9, %p1712_p10 }
 0x3c5   : > { %p1604_p2 = por %p1603_p1, %p1602_p0 }
 0x3c6   : > { %p1600_p13 = pneg %p1599_p12 }
 0x3c7   : > { %p1606_p4 = por %p1605_p3, %p1604_p2 }
 0x3c9   : > { %p1607_p5 = pnand %p1606_p4, %p1600_p13 }
 0x3cb   : > { %1610 = shalt.err (!%p1607_p5)
}
 0x3cc   : > { %1393 = dma.vmem_to_hbm [thread:$0]  (%p1712_p10), %s2289_s23, 16, %s2287_s29, %s1195_s20  }
 0x3cd PF: > { %p1399_p6 = scmp.ge.s32.totalorder %s1647_s19, 2  ;;  %s1219_s13 = sand.u32 1, %s1635_s17  }
 0x3ce   : > { %s1220_s14 = scalar_lea.sflag [#allocation5], %s1219_s13 }
 0x3cf   : > { %p1396_p7 = pnand %p1399_p6, %p1716_p11 }
 0x3d1   : > { %1630 = dma.done.wait (!%p1396_p7), %s1220_s14, 16  }
 0x3d2   : > { %1632 = vsyncadd (!%p1396_p7), %s1220_s14, 4294967280  ;;  %p19_p8 = scmp.ge.s32.totalorder %s1699_s22, 6   ;;  %s2337_s17 = smov %s1639_s18 }
 0x3d3   : > { %s2338_s18 = smov %s1643_s0  ;;  %s2339_s0 = smov %s1710_s25 }
 0x3d4   : > { %s2340_s19 = smov %s1699_s22  ;;  %21 = sbr.rel (!%p19_p8) target bundleno = 18 (0x12), region = 65 }
 0x3db   :  { %1224 = vsyncpa [#allocation5], 1 }
 0x3dc   :  { %1226 = vsyncpa [#allocation5 + $0x1], 1 }

// kernel: tpu_custom_call.1
= control target key start
LH: loop header
LB: loop body
LE: loop exit
PB: predicated region body
PF: predicated region fallthrough
CT: control target
= control target key end

     0   :  { %s2331_s0 = inlined_call_operand.vmem [shape: s32[8], index: 0, kind: input, shape index: {}]   ;;  %s2332_s1 = inlined_call_operand.vmem [shape: f32[4,128,32], index: 1, kind: input, shape index: {}]   ;;  %s2333_s2 = inlined_call_operand.vmem [shape: bf16[96,32], index: 2, kind: input, shape index: {}]   ;;  %s2334_s3 = inlined_call_operand.hbm [shape: f32[4,1,128], index: 3, kind: output, shape index: {}]  }
   0x1   :  { %s8_s14 = sshll.u32 %s2331_s0, 4  ;;  %s9_s14 = int_to_ptr.vmem [resolvable:$true] %s8_s14 }
   0x2   :  { %s1571_s15 = scalar_lea.vmem %s9_s14, 16  ;;  %p1576_p1 = scmp.lt.s32.totalorder %s9_s14, %s9_s14 }
   0x3   :  { %p1572_p0 = scmp.ne.s32.totalorder %s9_s14, %s1571_s15  ;;  %p1577_p2 = scmp.lt.s32.totalorder %s1571_s15, %s1571_s15 }
   0x5   :  { %p1578_p3 = por %p1577_p2, %p1576_p1 }
   0x7   :  { %p1579_p4 = pnand %p1578_p3, %p1572_p0 }
   0x9   :  { %1582 = shalt.err (!%p1579_p4)  }
   0xa   :  { %s1649_s16 = smov [#allocation3]  }
   0xb   :  { %11 = dma.vmem_to_smem %s9_s14, 16, %s1649_s16, [#allocation2] }
   0xc   :  { %1627 = dma.done.wait [#allocation2], 16 }
   0xd   :  { %1628 = vsyncadd [#allocation2], 4294967280 }
   0xe   :  { %13 = sfence }
   0xf   :  { %14 = vsyncpa [#allocation5], 0 }
  0x10   :  { %16 = vsyncpa [#allocation5 + $0x1], 0  ;;  %s1674_s17 = smov 0   ;;  %s1676_s18 = smov 0  }
  0x11   :  { %s1678_s0 = smov 0   ;;  %s1680_s19 = smov 0  }
  0x12 LB: > { %s1695_s20 = sadd.s32 4294967295, %s1647_s19   ;;  %s1266_s21 = sadd.s32 4294967294, %s1647_s19   ;;  %s1647_s19 = sphi %s1680_s19, %s2340_s19   ;;  %s1643_s0 = sphi %s1678_s0, %s2339_s0   ;;  %s1639_s18 = sphi %s1676_s18, %s2338_s18   ;;  %s1635_s17 = sphi %s1674_s17, %s2337_s17  }
  0x13   : > { %s1699_s22 = sadd.s32 1, %s1647_s19   ;;  %s76_s23 = sadd.s32 1, %s1643_s0 }
  0x14   : > { %s73_s24 = ssub.s32 %s1647_s19, %s1699_s22  ;;  %p86_p5 = scmp.ne.s32.totalorder %s1643_s0, %s1639_s18 }
  0x15   : > { %p74_p6 = scmp.eq.s32.totalorder %s73_s24, 0  ;;  %p87_p7 = scmp.eq.s32.totalorder %s1695_s20, 3 }
  0x16   : > { %p92_p8 = scmp.ne.s32.totalorder %s1639_s18, %s1635_s17  ;;  %p93_p9 = scmp.eq.s32.totalorder %s1266_s21, 3 }
  0x17   : > { %s1710_s25 = scalar_select %p74_p6, %s1643_s0, %s76_s23  }
  0x18   : > { %p1712_p10 = por %p87_p7, %p86_p5  ;;  %p1716_p11 = por %p93_p9, %p92_p8 }
  0x19   : > { %p1269_p12 = scmp.ge.s32.totalorder %s1647_s19, 1  ;;  %p122_p13 = scmp.lt.s32.totalorder %s1647_s19, 5 }
  0x1b   : > { %p123_p0 = pnand %p1269_p12, %p122_p13 }
  0x1c   : > { %p143_p1 = scmp.lt.s32.totalorder (!%p123_p0), %s1695_s20, 3  ;;  %vm181_vm0 = vcmask (!%p123_p0), 261120   ;;  %v1433_v0 = vld [vmem:[%s2333_s2] sm:$0xff] (!%p123_p0)   ;;  %v1434_v1 = vld [vmem:[%s2333_s2 + $0x8] sm:$0xff] (!%p123_p0)   ;;  %v1435_v16 = vld [vmem:[%s2333_s2 + $0x10] sm:$0xff] (!%p123_p0)   ;;  %s1286_s12 = sshll.u32 (!%p123_p0), %s1695_s20, 1 }
  0x1d   : > { %126 = sbr.rel (%p123_p0) target bundleno = 973 (0x3cd), region = 28  ;;  %1383 = vmatprep.subr.msk.bf16.mxu0 (!%p123_p0), %vm181_vm0, %v1433_v0  ;;  %v369_v2 = vsel (!%p123_p0), %vm181_vm0, %v1433_v0, 0  ;;  %v372_v15 = vsel (!%p123_p0), %vm181_vm0, %v1434_v1, 0  ;;  %v375_v29 = vsel (!%p123_p0), %vm181_vm0, %v1435_v16, 0  ;;  %s629_s13 = sld [smem:[#allocation3 + %s1286_s12]] (!%p123_p0)  ;;  %v1436_v41 = vld [vmem:[%s2333_s2 + $0x18] sm:$0xff] (!%p123_p0)  }
  0x1e   : > { %1332 = vmatpush3.bf16.xpose.msra.mxu0 (!%p123_p0), %v369_v2  ;;  %v378_v43 = vsel (!%p123_p0), %vm181_vm0, %v1436_v41, 0  ;;  %v1437_v54 = vld [vmem:[%s2333_s2 + $0x20] sm:$0xff] (!%p123_p0)   ;;  %s912_s5 = sadd.s32 (!%p123_p0), 1, %s1286_s12  ;;  %v1440_v61 = vld [vmem:[%s2333_s2 + $0x28] sm:$0xff] (!%p123_p0)   ;;  %vm483_vm1 = vcmask (!%p123_p0), 785408   ;;  %vm741_vm2 = vcmask (!%p123_p0), 195584  }
  0x1f   : > { %1384 = vmatprep.subr.msk.bf16.mxu0 (!%p123_p0), %vm181_vm0, %v1434_v1  ;;  %v381_v56 = vsel (!%p123_p0), %vm181_vm0, %v1437_v54, 0  ;;  %v384_v62 = vsel (!%p123_p0), %vm181_vm0, %v1440_v61, 0  ;;  %vm865_vm3 = vcmask (!%p123_p0), 130112   ;;  %vm872_vm4 = vcmask (!%p123_p0), 195712   ;;  %s141_s15 = sand.u32 (!%p123_p0), 1, %s1639_s18   ;;  %s1650_s4 = smov (!%p123_p0), [#allocation4]  }
  0x20   : > { %vm879_vm5 = vcmask (!%p123_p0), 261312   ;;  %vm886_vm6 = vcmask (!%p123_p0), 326912   ;;  %vm893_vm7 = vcmask (!%p123_p0), 392512   ;;  %vm1147_vm8 = vcmask (!%p123_p0), 654912  }
  0x21   : > { %vm900_vm9 = vcmask (!%p123_p0), 458112   ;;  %vm1154_vm10 = vcmask (!%p123_p0), 720512   ;;  %vm907_vm11 = vcmask (!%p123_p0), 523712   ;;  %vm910_vm12 = vcmask (!%p123_p0), 516096  }
  0x22   : > { %vm1161_vm13 = vcmask (!%p123_p0), 786112   ;;  %vm1168_vm14 = vcmask (!%p123_p0), 851712   ;;  %vm1175_vm15 = vcmask (!%p123_p0), 917312  }
  0x23   : > { %s630_s16 = smul.u32 (!%p123_p0), 24, %s629_s13 }
  0x24   : > { %s144_s30 = scalar_select %p143_p1, %s1695_s20, 3 }
  0x25   : > { %s631_s21 = sshra.s32 %s630_s16, 3  ;;  %s142_s16 = scalar_lea.vmem [#allocation4], %s141_s15 }
  0x26   : > { %s1304_s6 = sshll.u32 %s144_s30, 7  ;;  %1334 = vmatpush3.bf16.xpose.msra.mxu0 %v372_v15  ;;  %s1287_s23 = sshll.u32 %s631_s21, 2 }
  0x27   : > { %s1735_s9 = scalar_lea.vmem %s2332_s1, %s1304_s6  ;;  %1385 = vmatprep.subr.msk.bf16.mxu0 %vm181_vm0, %v1435_v16  ;;  %s634_s29 = scalar_lea.vmem %s2333_s2, %s1287_s23 }
  0x28   : > { %v1739_v3 = vld [vmem:[%s1735_s9 + $0x10] sm:$0xff]  ;;  %v1742_v4 = vld [vmem:[%s1735_s9] sm:$0xff]  ;;  %v1745_v5 = vld [vmem:[%s1735_s9 + $0x18] sm:$0xff]  ;;  %s913_s6 = sld [smem:[#allocation3 + %s912_s5]]  ;;  %s1301_s21 = sshll.u32 %s1695_s20, 4 }
  0x29   : > { %v167_v6 = vmul.f32 %v1739_v3, %v1739_v3  ;;  %v165_v7 = vmul.f32 %v1742_v4, %v1742_v4  ;;  %v168_v8 = vmul.f32 %v1745_v5, %v1745_v5  ;;  %v1754_v9 = vld [vmem:[%s1735_s9 + $0x8] sm:$0xff]  ;;  %v1762_v12 = vld [vmem:[%s1735_s9 + $0x20] sm:$0xff]  ;;  %v1777_v21 = vld [vmem:[%s1735_s9 + $0x38] sm:$0xff]  ;;  %s1207_s23 = sshll.u32 %s142_s16, 4  ;;  %s1195_s20 = scalar_lea.sflag [#allocation5], %s141_s15  ;;  %s2289_s23 = int_to_ptr.vmem [resolvable:$true] %s1207_s23 }
  0x2a   : > { %v166_v10 = vmul.f32 %v1754_v9, %v1754_v9  ;;  %v1759_v11 = vld [vmem:[%s1735_s9 + $0x28] sm:$0xff]  ;;  %v169_v20 = vmul.f32 %v1762_v12, %v1762_v12  ;;  %v1780_v22 = vld [vmem:[%s1735_s9 + $0x30] sm:$0xff]  ;;  %v172_v25 = vmul.f32 %v1777_v21, %v1777_v21  ;;  %v1793_v28 = vld [vmem:[%s1735_s9 + $0x40] sm:$0xff]  ;;  %s1583_s30 = scalar_lea.vmem %s2289_s23, 16  ;;  %s1587_s5 = sshll.u32 %s1650_s4, 4  ;;  %s1588_s5 = int_to_ptr.vmem [resolvable:$false] %s1587_s5 }
  0x2b   : > { %v188_v13 = vsel %vm181_vm0, %v167_v6, 0.0  ;;  %v182_v14 = vsel %vm181_vm0, %v165_v7, 0.0  ;;  %v191_v17 = vsel %vm181_vm0, %v168_v8, 0.0  ;;  %v170_v19 = vmul.f32 %v1759_v11, %v1759_v11  ;;  %v1790_v27 = vld [vmem:[%s1735_s9 + $0x48] sm:$0xff]  ;;  %v1804_v34 = vld [vmem:[%s1735_s9 + $0x58] sm:$0xff]  ;;  %v1807_v35 = vld [vmem:[%s1735_s9 + $0x50] sm:$0xff]  ;;  %p1584_p2 = scmp.ne.s32.totalorder %s2289_s23, %s1583_s30  ;;  %p1590_p5 = scmp.lt.s32.totalorder %s2289_s23, %s1588_s5 }
  0x2c   : > { %189 = vadd.xlane.f32.xlu1 %v188_v13  ;;  %183 = vadd.xlane.f32.xlu0 %v182_v14  ;;  %v185_v18 = vsel %vm181_vm0, %v166_v10, 0.0  ;;  %v194_v24 = vsel %vm181_vm0, %v169_v20, 0.0  ;;  %v171_v26 = vmul.f32 %v1780_v22, %v1780_v22  ;;  %v203_v30 = vsel %vm181_vm0, %v172_v25, 0.0  ;;  %v1818_v40 = vld [vmem:[%s1735_s9 + $0x68] sm:$0xff]  ;;  %v1824_v42 = vld [vmem:[%s1735_s9 + $0x60] sm:$0xff]  ;;  %v1835_v48 = vld [vmem:[%s1735_s9 + $0x78] sm:$0xff] }
  0x2d   : > { %v197_v23 = vsel %vm181_vm0, %v170_v19, 0.0  ;;  %v174_v32 = vmul.f32 %v1790_v27, %v1790_v27  ;;  %v173_v33 = vmul.f32 %v1793_v28, %v1793_v28  ;;  %v176_v38 = vmul.f32 %v1804_v34, %v1804_v34  ;;  %v1838_v49 = vld [vmem:[%s1735_s9 + $0x70] sm:$0xff]  ;;  %v1438_v55 = vld [vmem:[%s634_s29] sm:$0xff]   ;;  %v1439_v60 = vld [vmem:[%s634_s29 + $0x8] ss:$0 sps:$4 sm:$0xff]   ;;  %s2287_s29 = scalar_lea.hbm %s2334_s3, %s1301_s21  ;;  %p1585_p3 = pnand %p1584_p2, %p1712_p10 }
  0x2e   : > { %v200_v31 = vsel %vm181_vm0, %v171_v26, 0.0  ;;  %1336 = vmatpush3.bf16.xpose.msra.mxu0 %v375_v29  ;;  %v175_v39 = vmul.f32 %v1807_v35, %v1807_v35  ;;  %v178_v44 = vmul.f32 %v1818_v40, %v1818_v40  ;;  %v177_v47 = vmul.f32 %v1824_v42, %v1824_v42  ;;  %1389 = vmatprep.subr.msk.bf16.mxu1 %vm181_vm0, %v1438_v55  ;;  %s914_s9 = smul.u32 24, %s913_s6  ;;  %s1589_s6 = scalar_lea.vmem %s1588_s5, 32 }
  0x2f   : > { %v209_v36 = vsel %vm181_vm0, %v174_v32, 0.0  ;;  %v206_v37 = vsel %vm181_vm0, %v173_v33, 0.0  ;;  %1386 = vmatprep.subr.msk.bf16.mxu0 %vm181_vm0, %v1436_v41  ;;  %v215_v45 = vsel %vm181_vm0, %v176_v38, 0.0  ;;  %v180_v52 = vmul.f32 %v1835_v48, %v1835_v48  ;;  %p1586_p4 = pneg %p1585_p3  ;;  %p1591_p6 = scmp.lt.s32.totalorder %s1589_s6, %s1583_s30 }
  0x30   : > { %192 = vadd.xlane.f32.xlu1 %v191_v17  ;;  %186 = vadd.xlane.f32.xlu0 %v185_v18  ;;  %v212_v46 = vsel %vm181_vm0, %v175_v39, 0.0  ;;  %v221_v50 = vsel %vm181_vm0, %v178_v44, 0.0  ;;  %v218_v51 = vsel %vm181_vm0, %v177_v47, 0.0  ;;  %v179_v53 = vmul.f32 %v1838_v49, %v1838_v49  ;;  %s915_s10 = sshra.s32 %s914_s9, 3 }
  0x31   : > { %v647_v57 = vsel %vm181_vm0, %v1438_v55, 0  ;;  %v227_v58 = vsel %vm181_vm0, %v180_v52, 0.0  ;;  %v650_v63 = vsel %vm181_vm0, %v1439_v60, 0  ;;  %s1294_s11 = sshll.u32 %s915_s10, 2  ;;  %p1592_p7 = por %p1591_p6, %p1590_p5 }
  0x32   : > { %v224_v59 = vsel %vm181_vm0, %v179_v53, 0.0  ;;  %1360 = vmatpush3.bf16.xpose.msra.mxu1 %v647_v57  ;;  %s1870_s14 = scalar_lea.vmem %s2333_s2, %s1294_s11 }
  0x33   : > { %1390 = vmatprep.subr.msk.bf16.mxu1 %vm181_vm0, %v1439_v60  ;;  %v1441_v0 = vld [vmem:[%s1870_s14] sm:$0xff]   ;;  %p1593_p8 = pnand %p1592_p7, %p1586_p4 }
  0x34   : > { %198 = vadd.xlane.f32.xlu1 %v197_v23  ;;  %195 = vadd.xlane.f32.xlu0 %v194_v24 }
  0x36   : > { %1338 = vmatpush3.bf16.xpose.msra.mxu0 %v378_v43 }
  0x37   : > { %1387 = vmatprep.subr.msk.bf16.mxu0 %vm181_vm0, %v1437_v54 }
  0x38   : > { %204 = vadd.xlane.f32.xlu1 %v203_v30  ;;  %201 = vadd.xlane.f32.xlu0 %v200_v31 }
  0x3a   : > { %1362 = vmatpush3.bf16.xpose.msra.mxu1 %v650_v63 }
  0x3b   : > { %1391 = vmatprep.subr.msk.bf16.mxu1 %vm181_vm0, %v1441_v0 }
  0x3c   : > { %210 = vadd.xlane.f32.xlu1 %v209_v36  ;;  %207 = vadd.xlane.f32.xlu0 %v206_v37 }
  0x3e   : > { %1340 = vmatpush3.bf16.xpose.msra.mxu0 %v381_v56 }
  0x3f   : > { %1388 = vmatprep.subr.msk.bf16.mxu0 %vm181_vm0, %v1440_v61  ;;  %v1442_v61 = vld [vmem:[%s1870_s14 + $0x8] ss:$0 sps:$4 sm:$0xff]  }
  0x40   : > { %216 = vadd.xlane.f32.xlu1 %v215_v45  ;;  %213 = vadd.xlane.f32.xlu0 %v212_v46 }
  0x44   : > { %222 = vadd.xlane.f32.xlu1 %v221_v50  ;;  %219 = vadd.xlane.f32.xlu0 %v218_v51 }
  0x46   : > { %1342 = vmatpush3.bf16.xpose.msra.mxu0 %v384_v62 }
  0x48   : > { %228 = vadd.xlane.f32.xlu1 %v227_v58  ;;  %225 = vadd.xlane.f32.xlu0 %v224_v59 }
  0xb9   : > { %v190_v1 = vpop.xlane.xlu1 %189  ;;  %v184_v2 = vpop.xlane.xlu0 %183 }
  0xba   : > { %v232_v6 = vmax.f32 %v190_v1, 1e-24  ;;  %v230_v7 = vmax.f32 %v184_v2, 1e-24 }
  0xbc   : > { %1443 = vrsqrt.f32 %v232_v6 }
  0xbd   : > { %1445 = vrsqrt.f32 %v230_v7  ;;  %v193_v8 = vpop.xlane.xlu1 %192  ;;  %v187_v10 = vpop.xlane.xlu0 %186 }
  0xbe   : > { %v233_v13 = vmax.f32 %v193_v8, 1e-24  ;;  %v231_v14 = vmax.f32 %v187_v10, 1e-24 }
  0xc0   : > { %1447 = vrsqrt.f32 %v233_v13 }
  0xc1   : > { %1449 = vrsqrt.f32 %v231_v14  ;;  %v199_v15 = vpop.xlane.xlu1 %198  ;;  %v196_v16 = vpop.xlane.xlu0 %195 }
  0xc2   : > { %v235_v17 = vmax.f32 %v199_v15, 1e-24  ;;  %v234_v18 = vmax.f32 %v196_v16, 1e-24 }
  0xc4   : > { %1451 = vrsqrt.f32 %v235_v17 }
  0xc5   : > { %1453 = vrsqrt.f32 %v234_v18  ;;  %v205_v19 = vpop.xlane.xlu1 %204  ;;  %v202_v20 = vpop.xlane.xlu0 %201 }
  0xc6   : > { %v1444_v23 = vpop.eup %1443  ;;  %v237_v24 = vmax.f32 %v205_v19, 1e-24  ;;  %v236_v25 = vmax.f32 %v202_v20, 1e-24  ;;  %v934_v19 = vsel %vm181_vm0, %v1442_v61, 0 }
  0xc7   : > { %v1446_v26 = vpop.eup %1445  ;;  %v264_v29 = vmul.f32 10.0, %v1444_v23 }
  0xc8   : > { %1455 = vrsqrt.f32 %v237_v24  ;;  %v262_v33 = vmul.f32 10.0, %v1446_v26 }
  0xc9   : > { %1457 = vrsqrt.f32 %v236_v25  ;;  %v211_v30 = vpop.xlane.xlu1 %210  ;;  %v208_v31 = vpop.xlane.xlu0 %207  ;;  %v280_v43 = vmul.f32 %v264_v29, %v1739_v3 }
  0xca   : > { %v1448_v32 = vpop.eup %1447  ;;  %v239_v36 = vmax.f32 %v211_v30, 1e-24  ;;  %v238_v37 = vmax.f32 %v208_v31, 1e-24  ;;  %v278_v52 = vmul.f32 %v262_v33, %v1742_v4 }
  0xcb   : > { %v1450_v38 = vpop.eup %1449  ;;  %v265_v39 = vmul.f32 10.0, %v1448_v32 }
  0xcc   : > { %v263_v41 = vmul.f32 10.0, %v1450_v38  ;;  %1459 = vrsqrt.f32 %v239_v36 }
  0xcd   : > { %v281_v44 = vmul.f32 %v265_v39, %v1745_v5  ;;  %1461 = vrsqrt.f32 %v238_v37  ;;  %v217_v45 = vpop.xlane.xlu1 %216  ;;  %v214_v46 = vpop.xlane.xlu0 %213  ;;  %v931_v5 = vsel %vm181_vm0, %v1441_v0, 0 }
  0xce   : > { %v1452_v47 = vpop.eup %1451  ;;  %v241_v50 = vmax.f32 %v217_v45, 1e-24  ;;  %v240_v51 = vmax.f32 %v214_v46, 1e-24  ;;  %v279_v53 = vmul.f32 %v263_v41, %v1754_v9 }
  0xcf   : > { %v1454_v54 = vpop.eup %1453  ;;  %v267_v55 = vmul.f32 10.0, %v1452_v47  ;;  %v295_v56 = vpack.c.bf16 %v281_v44, %v280_v43 }
  0xd0   : > { %v266_v57 = vmul.f32 10.0, %v1454_v54  ;;  %1463 = vrsqrt.f32 %v241_v50  ;;  %v294_v58 = vpack.c.bf16 %v279_v53, %v278_v52 }
  0xd1   : > { %v283_v3 = vmul.f32 %v267_v55, %v1759_v11  ;;  %1465 = vrsqrt.f32 %v240_v51  ;;  %v223_v59 = vpop.xlane.xlu1 %222  ;;  %v220_v60 = vpop.xlane.xlu0 %219 }
  0xd2   : > { %v1456_v62 = vpop.eup %1455  ;;  %v282_v63 = vmul.f32 %v266_v57, %v1762_v12  ;;  %1343 = vmatprep.mubr.msk.bf16.mxu0 %vm181_vm0, %v294_v58  ;;  %1363 = vmatprep.mubr.msk.bf16.mxu1 %vm181_vm0, %v294_v58  ;;  %v243_v4 = vmax.f32 %v223_v59, 1e-24  ;;  %v242_v9 = vmax.f32 %v220_v60, 1e-24 }
  0xd3   : > { %v1458_v1 = vpop.eup %1457  ;;  %v269_v2 = vmul.f32 10.0, %v1456_v62  ;;  %1344 = vmatmul.mubr.msk.bf16.vlgmr.msra.gmra.mrb[0].mxu0 %vm181_vm0, %v295_v56  ;;  %1364 = vmatmul.mubr.msk.bf16.vlgmr.msra.gmra.mrb[0].mxu1 %vm181_vm0, %v295_v56 }
  0xd4   : > { %v268_v11 = vmul.f32 10.0, %v1458_v1  ;;  %1372 = vmatpush3.bf16.xpose.msra.mxu1 %v931_v5  ;;  %1467 = vrsqrt.f32 %v243_v4  ;;  %v296_v0 = vpack.c.bf16 %v283_v3, %v282_v63 }
  0xd5   : > { %v285_v6 = vmul.f32 %v269_v2, %v1777_v21  ;;  %1469 = vrsqrt.f32 %v242_v9  ;;  %v229_v12 = vpop.xlane.xlu1 %228  ;;  %v226_v7 = vpop.xlane.xlu0 %225  ;;  %1392 = vmatprep.subr.msk.bf16.mxu1 %vm181_vm0, %v1442_v61 }
  0xd6   : > { %v1460_v8 = vpop.eup %1459  ;;  %v284_v10 = vmul.f32 %v268_v11, %v1780_v22  ;;  %1347 = vmatprep.mubr.msk.bf16.mxu0 %vm181_vm0, %v296_v0  ;;  %1367 = vmatprep.mubr.msk.bf16.mxu1 %vm181_vm0, %v296_v0  ;;  %v245_v13 = vmax.f32 %v229_v12, 1e-24  ;;  %v244_v14 = vmax.f32 %v226_v7, 1e-24 }
  0xd7   : > { %v1462_v15 = vpop.eup %1461  ;;  %v271_v16 = vmul.f32 10.0, %v1460_v8 }
  0xd8   : > { %v270_v17 = vmul.f32 10.0, %v1462_v15  ;;  %1471 = vrsqrt.f32 %v245_v13  ;;  %v297_v18 = vpack.c.bf16 %v285_v6, %v284_v10 }
  0xd9   : > { %v287_v21 = vmul.f32 %v271_v16, %v1790_v27  ;;  %1473 = vrsqrt.f32 %v244_v14 }
  0xda   : > { %v1464_v20 = vpop.eup %1463  ;;  %v286_v23 = vmul.f32 %v270_v17, %v1793_v28 }
  0xdb   : > { %v1466_v22 = vpop.eup %1465  ;;  %v273_v24 = vmul.f32 10.0, %v1464_v20  ;;  %1348 = vmatmul.mubr.msk.bf16.gmra.mrb[4].mxu0 %vm181_vm0, %v297_v18  ;;  %1368 = vmatmul.mubr.msk.bf16.gmra.mrb[4].mxu1 %vm181_vm0, %v297_v18 }
  0xdc   : > { %v272_v25 = vmul.f32 10.0, %v1466_v22  ;;  %1374 = vmatpush3.bf16.xpose.msra.mxu1 %v934_v19  ;;  %v298_v26 = vpack.c.bf16 %v287_v21, %v286_v23 }
  0xdd   : > { %v289_v29 = vmul.f32 %v273_v24, %v1804_v34 }
  0xde   : > { %v1468_v30 = vpop.eup %1467  ;;  %v288_v27 = vmul.f32 %v272_v25, %v1807_v35  ;;  %1351 = vmatprep.mubr.msk.bf16.mxu0 %vm181_vm0, %v298_v26  ;;  %1375 = vmatprep.mubr.msk.bf16.mxu1 %vm181_vm0, %v298_v26 }
  0xdf   : > { %v1470_v31 = vpop.eup %1469  ;;  %v275_v28 = vmul.f32 10.0, %v1468_v30 }
  0xe0   : > { %v274_v32 = vmul.f32 10.0, %v1470_v31  ;;  %v299_v33 = vpack.c.bf16 %v289_v29, %v288_v27 }
  0xe1   : > { %v291_v36 = vmul.f32 %v275_v28, %v1818_v40 }
  0xe2   : > { %v1472_v37 = vpop.eup %1471  ;;  %v290_v38 = vmul.f32 %v274_v32, %v1824_v42 }
  0xe3   : > { %v1474_v39 = vpop.eup %1473  ;;  %v277_v41 = vmul.f32 10.0, %v1472_v37  ;;  %1352 = vmatmul.mubr.msk.bf16.gmra.mrb[8].mxu0 %vm181_vm0, %v299_v33  ;;  %1376 = vmatmul.mubr.msk.bf16.vlgmr.msra.gmra.mrb[8].mxu1 %vm181_vm0, %v299_v33 }
  0xe4   : > { %v276_v34 = vmul.f32 10.0, %v1474_v39  ;;  %v300_v35 = vpack.c.bf16 %v291_v36, %v290_v38 }
  0xe5   : > { %v293_v43 = vmul.f32 %v277_v41, %v1835_v48 }
  0xe6   : > { %v292_v44 = vmul.f32 %v276_v34, %v1838_v49  ;;  %1355 = vmatprep.mubr.msk.bf16.mxu0 %vm181_vm0, %v300_v35  ;;  %1379 = vmatprep.mubr.msk.bf16.mxu1 %vm181_vm0, %v300_v35 }
  0xe8   : > { %v301_v40 = vpack.c.bf16 %v293_v43, %v292_v44 }
  0xeb   : > { %1356 = vmatmul.mubr.msk.bf16.gmra.mrb[12].mxu0 %vm181_vm0, %v301_v40  ;;  %1380 = vmatmul.mubr.msk.bf16.gmra.mrb[12].mxu1 %vm181_vm0, %v301_v40  ;;  %vm1182_vm0 = vcmask 982912  }
 0x1a6   : > { %v1910_v42 = vpop.f32.mrb[0].mxu0  ;;  %v1912_v45 = vpop.f32.mrb[0].mxu1 }
 0x1a7   : > { %v1914_v46 = vpop.f32.mrb[1].mxu0  ;;  %v1916_v47 = vpop.f32.mrb[1].mxu1  ;;  %v490_v48 = vsel %vm483_vm1, %v1910_v42, -inf }
 0x1a8   : > { %v1920_v49 = vpop.f32.mrb[2].mxu1  ;;  %491 = vmax.xlane.f32.xlu0 %v490_v48  ;;  %v1922_v50 = vpop.f32.mrb[2].mxu0  ;;  %v484_v54 = vsel %vm483_vm1, %v1914_v46, -inf }
 0x1a9   : > { %v1924_v51 = vpop.f32.mrb[3].mxu0  ;;  %v1926_v52 = vpop.f32.mrb[3].mxu1  ;;  %v493_v53 = vsel %vm483_vm1, %v1922_v50, -inf }
 0x1aa   : > { %494 = vmax.xlane.f32.xlu1 %v493_v53  ;;  %v487_v55 = vsel %vm483_vm1, %v1924_v51, -inf }
 0x1ac   : > { %485 = vmax.xlane.f32.xlu0 %v484_v54 }
 0x1ae   : > { %488 = vmax.xlane.f32.xlu1 %v487_v55  ;;  %v1934_v56 = vpop.f32.mrb[4].mxu0  ;;  %v1936_v57 = vpop.f32.mrb[4].mxu1 }
 0x1af   : > { %v1938_v58 = vpop.f32.mrb[5].mxu0  ;;  %v1940_v3 = vpop.f32.mrb[5].mxu1  ;;  %v502_v62 = vsel %vm483_vm1, %v1934_v56, -inf }
 0x1b0   : > { %v1942_v5 = vpop.f32.mrb[6].mxu0  ;;  %v1944_v59 = vpop.f32.mrb[6].mxu1  ;;  %v496_v63 = vsel %vm483_vm1, %v1938_v58, -inf }
 0x1b1   : > { %v1946_v60 = vpop.f32.mrb[7].mxu0  ;;  %v1948_v61 = vpop.f32.mrb[7].mxu1  ;;  %v505_v20 = vsel %vm483_vm1, %v1942_v5, -inf }
 0x1b2   : > { %503 = vmax.xlane.f32.xlu1 %v502_v62  ;;  %v499_v8 = vsel %vm483_vm1, %v1946_v60, -inf }
 0x1b6   : > { %497 = vmax.xlane.f32.xlu1 %v496_v63  ;;  %v1954_v4 = vpop.f32.mrb[8].mxu0  ;;  %v1956_v9 = vpop.f32.mrb[8].mxu1 }
 0x1b7   : > { %v1958_v1 = vpop.f32.mrb[9].mxu0  ;;  %v1960_v2 = vpop.f32.mrb[9].mxu1  ;;  %v514_v11 = vsel %vm483_vm1, %v1954_v4, -inf }
 0x1b8   : > { %v1964_v0 = vpop.f32.mrb[10].mxu1  ;;  %515 = vmax.xlane.f32.xlu0 %v514_v11  ;;  %v1966_v6 = vpop.f32.mrb[10].mxu0  ;;  %v508_v13 = vsel %vm483_vm1, %v1958_v1, -inf }
 0x1b9   : > { %v1968_v12 = vpop.f32.mrb[11].mxu0  ;;  %v1970_v7 = vpop.f32.mrb[11].mxu1  ;;  %v517_v10 = vsel %vm483_vm1, %v1966_v6, -inf }
 0x1ba   : > { %500 = vmax.xlane.f32.xlu1 %v499_v8  ;;  %v511_v16 = vsel %vm483_vm1, %v1968_v12, -inf }
 0x1bc   : > { %518 = vmax.xlane.f32.xlu0 %v517_v10 }
 0x1be   : > { %509 = vmax.xlane.f32.xlu1 %v508_v13  ;;  %v1978_v14 = vpop.f32.mrb[12].mxu0  ;;  %v1980_v15 = vpop.f32.mrb[12].mxu1 }
 0x1bf   : > { %v1984_v17 = vpop.f32.mrb[13].mxu0  ;;  %v1986_v18 = vpop.f32.mrb[13].mxu1  ;;  %v526_v29 = vsel %vm483_vm1, %v1978_v14, -inf }
 0x1c0   : > { %512 = vmax.xlane.f32.xlu0 %v511_v16  ;;  %v1988_v21 = vpop.f32.mrb[14].mxu1  ;;  %v1990_v19 = vpop.f32.mrb[14].mxu0  ;;  %v520_v23 = vsel %vm483_vm1, %v1984_v17, -inf }
 0x1c1   : > { %v1996_v22 = vpop.f32.mrb[15].mxu0  ;;  %v1998_v24 = vpop.f32.mrb[15].mxu1  ;;  %v529_v25 = vsel %vm483_vm1, %v1990_v19, -inf }
 0x1c2   : > { %506 = vmax.xlane.f32.xlu1 %v505_v20  ;;  %v523_v26 = vsel %vm483_vm1, %v1996_v22, -inf }
 0x1c4   : > { %521 = vmax.xlane.f32.xlu0 %v520_v23 }
 0x1c6   : > { %530 = vmax.xlane.f32.xlu1 %v529_v25 }
 0x1c8   : > { %524 = vmax.xlane.f32.xlu0 %v523_v26 }
 0x1cc   : > { %527 = vmax.xlane.f32.xlu0 %v526_v29 }
 0x235   : > { %v492_v30 = vpop.xlane.xlu0 %491 }
 0x236   : > { %v534_v27 = vsub.f32 %v1910_v42, %v492_v30  ;;  %v2008_v31 = vsub.f32 %v1912_v45, %v492_v30 }
 0x237   : > { %v495_v28 = vpop.xlane.xlu1 %494 }
 0x238   : > { %v552_v32 = vmul.f32 1.442695, %v534_v27  ;;  %v729_v33 = vmul.f32 1.442695, %v2008_v31  ;;  %v535_v41 = vsub.f32 %v1922_v50, %v495_v28 }
 0x239   : > { %v486_v36 = vpop.xlane.xlu0 %485 }
 0x23a   : > { %1475 = vpow2.f32 %v552_v32  ;;  %v532_v37 = vsub.f32 %v1914_v46, %v486_v36  ;;  %v2013_v38 = vsub.f32 %v1916_v47, %v486_v36  ;;  %v554_v46 = vmul.f32 1.442695, %v535_v41 }
 0x23b   : > { %1477 = vpow2.f32 %v729_v33  ;;  %v489_v39 = vpop.xlane.xlu1 %488  ;;  %v2023_v47 = vsub.f32 %v1920_v49, %v495_v28 }
 0x23c   : > { %v548_v34 = vmul.f32 1.442695, %v532_v37  ;;  %v533_v35 = vsub.f32 %v1924_v51, %v489_v39  ;;  %v2018_v43 = vsub.f32 %v1926_v52, %v489_v39  ;;  %v725_v44 = vmul.f32 1.442695, %v2013_v38 }
 0x23d   : > { %v731_v52 = vmul.f32 1.442695, %v2023_v47 }
 0x23e   : > { %1479 = vpow2.f32 %v548_v34  ;;  %v550_v40 = vmul.f32 1.442695, %v533_v35  ;;  %v727_v42 = vmul.f32 1.442695, %v2018_v43 }
 0x23f   : > { %1481 = vpow2.f32 %v725_v44  ;;  %v504_v45 = vpop.xlane.xlu1 %503 }
 0x240   : > { %1483 = vpow2.f32 %v550_v40  ;;  %v538_v48 = vsub.f32 %v1934_v56, %v504_v45  ;;  %v2035_v56 = vsub.f32 %v1936_v57, %v504_v45 }
 0x241   : > { %1485 = vpow2.f32 %v727_v42 }
 0x242   : > { %1487 = vpow2.f32 %v554_v46  ;;  %v560_v63 = vmul.f32 1.442695, %v538_v48  ;;  %v737_v57 = vmul.f32 1.442695, %v2035_v56 }
 0x243   : > { %v498_v50 = vpop.xlane.xlu1 %497  ;;  %1489 = vpow2.f32 %v731_v52 }
 0x244   : > { %v1476_v51 = vpop.eup %1475  ;;  %v536_v25 = vsub.f32 %v1938_v58, %v498_v50  ;;  %v2060_v39 = vsub.f32 %v1940_v3, %v498_v50 }
 0x245   : > { %v2027_v53 = vpop.eup %1477  ;;  %v516_v54 = vpop.xlane.xlu0 %515  ;;  %v586_v55 = vsel %vm483_vm1, %v1476_v51, 0.0 }
 0x246   : > { %v542_v62 = vsub.f32 %v1954_v4, %v516_v54  ;;  %v2032_v49 = vsub.f32 %v1956_v9, %v516_v54  ;;  %587 = vadd.xlane.f32.xlu0 %v586_v55  ;;  %v748_v11 = vsel %vm741_vm2, %v2027_v53, 0.0  ;;  %v556_v37 = vmul.f32 1.442695, %v536_v25 }
 0x247   : > { %v2039_v8 = vpop.xlane.xlu1 %500  ;;  %749 = vadd.xlane.f32.xlu1 %v748_v11  ;;  %v733_v3 = vmul.f32 1.442695, %v2060_v39 }
 0x248   : > { %v1480_v10 = vpop.eup %1479  ;;  %v568_v13 = vmul.f32 1.442695, %v542_v62  ;;  %v1013_v16 = vmul.f32 1.442695, %v2032_v49 }
 0x249   : > { %v2042_v4 = vpop.eup %1481  ;;  %v519_v9 = vpop.xlane.xlu0 %518  ;;  %v580_v20 = vsel %vm483_vm1, %v1480_v10, 0.0 }
 0x24a   : > { %v1484_v23 = vpop.eup %1483  ;;  %1491 = vpow2.f32 %v568_v13  ;;  %581 = vadd.xlane.f32.xlu0 %v580_v20  ;;  %v543_v27 = vsub.f32 %v1966_v6, %v519_v9  ;;  %v742_v33 = vsel %vm741_vm2, %v2042_v4, 0.0 }
 0x24b   : > { %1493 = vpow2.f32 %v560_v63  ;;  %v2047_v26 = vpop.xlane.xlu1 %509  ;;  %v583_v29 = vsel %vm483_vm1, %v1484_v23, 0.0  ;;  %v2050_v30 = vpop.eup %1485 }
 0x24c   : > { %1495 = vpow2.f32 %v1013_v16  ;;  %v540_v28 = vsub.f32 %v1958_v1, %v2047_v26  ;;  %584 = vadd.xlane.f32.xlu1 %v583_v29  ;;  %v1488_v36 = vpop.eup %1487  ;;  %v745_v6 = vsel %vm741_vm2, %v2050_v30, 0.0  ;;  %v570_v41 = vmul.f32 1.442695, %v543_v27 }
 0x24d   : > { %v2055_v32 = vpop.xlane.xlu0 %512  ;;  %1497 = vpow2.f32 %v737_v57  ;;  %v2065_v1 = vsub.f32 %v1964_v0, %v519_v9  ;;  %v589_v44 = vsel %vm483_vm1, %v1488_v36, 0.0  ;;  %v2070_v40 = vpop.eup %1489 }
 0x24e   : > { %v564_v58 = vmul.f32 1.442695, %v540_v28  ;;  %743 = vadd.xlane.f32.xlu0 %v742_v33  ;;  %v2075_v42 = vsub.f32 %v1970_v7, %v2055_v32  ;;  %v751_v51 = vsel %vm741_vm2, %v2070_v40, 0.0  ;;  %v537_v7 = vsub.f32 %v1946_v60, %v2039_v8 }
 0x24f   : > { %v2067_v34 = vpop.xlane.xlu1 %506  ;;  %v1015_v0 = vmul.f32 1.442695, %v2065_v1  ;;  %v2098_v60 = vsub.f32 %v1948_v61, %v2039_v8  ;;  %v2109_v61 = vsub.f32 %v1960_v2, %v2047_v26  ;;  %v541_v2 = vsub.f32 %v1968_v12, %v2055_v32 }
 0x250   : > { %1499 = vpow2.f32 %v564_v58  ;;  %746 = vadd.xlane.f32.xlu1 %v745_v6  ;;  %v539_v46 = vsub.f32 %v1942_v5, %v2067_v34  ;;  %v1011_v55 = vmul.f32 1.442695, %v2075_v42  ;;  %v558_v9 = vmul.f32 1.442695, %v537_v7 }
 0x251   : > { %v522_v35 = vpop.xlane.xlu0 %521  ;;  %1501 = vpow2.f32 %v556_v37  ;;  %v735_v27 = vmul.f32 1.442695, %v2098_v60  ;;  %v1009_v37 = vmul.f32 1.442695, %v2109_v61  ;;  %v2133_v12 = vsub.f32 %v1944_v59, %v2067_v34 }
 0x252   : > { %590 = vadd.xlane.f32.xlu0 %v589_v44  ;;  %1503 = vpow2.f32 %v570_v41  ;;  %v562_v5 = vmul.f32 1.442695, %v539_v46  ;;  %v544_v8 = vsub.f32 %v1984_v17, %v522_v35  ;;  %v2123_v26 = vsub.f32 %v1986_v18, %v522_v35 }
 0x253   : > { %1505 = vpow2.f32 %v733_v3  ;;  %v531_v32 = vpop.xlane.xlu1 %530  ;;  %v739_v59 = vmul.f32 1.442695, %v2133_v12 }
 0x254   : > { %v1492_v45 = vpop.eup %1491  ;;  %1507 = vpow2.f32 %v1015_v0  ;;  %v572_v17 = vmul.f32 1.442695, %v544_v8  ;;  %v1017_v18 = vmul.f32 1.442695, %v2123_v26  ;;  %v547_v34 = vsub.f32 %v1990_v19, %v531_v32 }
 0x255   : > { %v1494_v48 = vpop.eup %1493  ;;  %v2080_v50 = vpop.xlane.xlu0 %524  ;;  %v610_v52 = vsel %vm483_vm1, %v1492_v45, 0.0  ;;  %1509 = vpow2.f32 %v1011_v55  ;;  %v566_v45 = vmul.f32 1.442695, %v541_v2  ;;  %v2154_v19 = vsub.f32 %v1988_v21, %v531_v32 }
 0x256   : > { %v2085_v54 = vpop.eup %1495  ;;  %752 = vadd.xlane.f32.xlu0 %v751_v51  ;;  %611 = vadd.xlane.f32.xlu1 %v610_v52  ;;  %v598_v11 = vsel %vm483_vm1, %v1494_v48, 0.0  ;;  %1511 = vpow2.f32 %v562_v5  ;;  %v545_v35 = vsub.f32 %v1996_v22, %v2080_v50  ;;  %v2145_v7 = vsub.f32 %v1998_v24, %v2080_v50 }
 0x257   : > { %v2090_v62 = vpop.eup %1497  ;;  %v1031_v10 = vsel %vm741_vm2, %v2085_v54, 0.0  ;;  %1513 = vpow2.f32 %v558_v9  ;;  %v1023_v9 = vmul.f32 1.442695, %v2154_v19 }
 0x258   : > { %v760_v25 = vsel %vm741_vm2, %v2090_v62, 0.0  ;;  %v574_v52 = vmul.f32 1.442695, %v545_v35 }
 0x259   : > { %v528_v63 = vpop.xlane.xlu0 %527 }
 0x25a   : > { %v1500_v13 = vpop.eup %1499  ;;  %v546_v16 = vsub.f32 %v1978_v14, %v528_v63  ;;  %599 = vadd.xlane.f32.xlu0 %v598_v11  ;;  %1032 = vadd.xlane.f32.xlu1 %v1031_v10  ;;  %v2101_v23 = vsub.f32 %v1980_v15, %v528_v63  ;;  %v578_v11 = vmul.f32 1.442695, %v547_v34  ;;  %v1019_v10 = vmul.f32 1.442695, %v2145_v7 }
 0x25b   : > { %v1502_v57 = vpop.eup %1501  ;;  %v604_v29 = vsel %vm483_vm1, %v1500_v13, 0.0 }
 0x25c   : > { %v576_v20 = vmul.f32 1.442695, %v546_v16  ;;  %v1504_v14 = vpop.eup %1503  ;;  %v1021_v15 = vmul.f32 1.442695, %v2101_v23  ;;  %v592_v33 = vsel %vm483_vm1, %v1502_v57, 0.0 }
 0x25d   : > { %v2113_v28 = vpop.eup %1505  ;;  %v613_v36 = vsel %vm483_vm1, %v1504_v14, 0.0 }
 0x25e   : > { %761 = vadd.xlane.f32.xlu0 %v760_v25  ;;  %605 = vadd.xlane.f32.xlu1 %v604_v29  ;;  %1515 = vpow2.f32 %v576_v20  ;;  %v2117_v58 = vpop.eup %1507  ;;  %v754_v41 = vsel %vm741_vm2, %v2113_v28, 0.0 }
 0x25f   : > { %1517 = vpow2.f32 %v735_v27  ;;  %v2125_v6 = vpop.eup %1509  ;;  %v1034_v44 = vsel %vm741_vm2, %v2117_v58, 0.0 }
 0x260   : > { %1519 = vpow2.f32 %v1021_v15  ;;  %v1512_v3 = vpop.eup %1511  ;;  %v1028_v48 = vsel %vm741_vm2, %v2125_v6, 0.0 }
 0x261   : > { %1521 = vpow2.f32 %v1009_v37  ;;  %v1514_v0 = vpop.eup %1513  ;;  %v601_v46 = vsel %vm483_vm1, %v1512_v3, 0.0 }
 0x262   : > { %593 = vadd.xlane.f32.xlu0 %v592_v33  ;;  %614 = vadd.xlane.f32.xlu1 %v613_v36  ;;  %1523 = vpow2.f32 %v572_v17  ;;  %v595_v55 = vsel %vm483_vm1, %v1514_v0, 0.0 }
 0x263   : > { %1525 = vpow2.f32 %v566_v45 }
 0x264   : > { %1527 = vpow2.f32 %v1017_v18 }
 0x265   : > { %1529 = vpow2.f32 %v739_v59 }
 0x266   : > { %755 = vadd.xlane.f32.xlu0 %v754_v41  ;;  %1035 = vadd.xlane.f32.xlu1 %v1034_v44  ;;  %1531 = vpow2.f32 %v574_v52 }
 0x267   : > { %1533 = vpow2.f32 %v578_v11 }
 0x268   : > { %v1516_v51 = vpop.eup %1515  ;;  %1535 = vpow2.f32 %v1019_v10 }
 0x269   : > { %v2147_v22 = vpop.eup %1517  ;;  %v622_v5 = vsel %vm483_vm1, %v1516_v51, 0.0  ;;  %1537 = vpow2.f32 %v1023_v9 }
 0x26a   : > { %602 = vadd.xlane.f32.xlu0 %v601_v46  ;;  %1029 = vadd.xlane.f32.xlu1 %v1028_v48  ;;  %v2151_v63 = vpop.eup %1519  ;;  %v757_v50 = vsel %vm741_vm2, %v2147_v22, 0.0 }
 0x26b   : > { %v2157_v24 = vpop.eup %1521  ;;  %v1043_v13 = vsel %vm741_vm2, %v2151_v63, 0.0 }
 0x26c   : > { %v1524_v16 = vpop.eup %1523  ;;  %v1025_v20 = vsel %vm741_vm2, %v2157_v24, 0.0 }
 0x26d   : > { %v1526_v21 = vpop.eup %1525  ;;  %v616_v57 = vsel %vm483_vm1, %v1524_v16, 0.0 }
 0x26e   : > { %596 = vadd.xlane.f32.xlu0 %v595_v55  ;;  %623 = vadd.xlane.f32.xlu1 %v622_v5  ;;  %v2167_v25 = vpop.eup %1527  ;;  %v607_v14 = vsel %vm483_vm1, %v1526_v21, 0.0 }
 0x26f   : > { %v2169_v29 = vpop.eup %1529  ;;  %v1037_v27 = vsel %vm741_vm2, %v2167_v25, 0.0 }
 0x270   : > { %v1532_v8 = vpop.eup %1531  ;;  %v763_v33 = vsel %vm741_vm2, %v2169_v29, 0.0 }
 0x271   : > { %v1534_v15 = vpop.eup %1533  ;;  %v619_v36 = vsel %vm483_vm1, %v1532_v8, 0.0 }
 0x272   : > { %758 = vadd.xlane.f32.xlu0 %v757_v50  ;;  %1044 = vadd.xlane.f32.xlu1 %v1043_v13  ;;  %v2177_v37 = vpop.eup %1535  ;;  %v625_v2 = vsel %vm483_vm1, %v1534_v15, 0.0  ;;  %vm1189_vm1 = vcmask 1048512  }
 0x273   : > { %v1040_v17 = vsel %vm741_vm2, %v2177_v37, 0.0  ;;  %v2182_v41 = vpop.eup %1537 }
 0x274   : > { %v1046_v44 = vsel %vm741_vm2, %v2182_v41, 0.0 }
 0x276   : > { %1026 = vadd.xlane.f32.xlu0 %v1025_v20  ;;  %617 = vadd.xlane.f32.xlu1 %v616_v57 }
 0x27a   : > { %608 = vadd.xlane.f32.xlu0 %v607_v14  ;;  %1038 = vadd.xlane.f32.xlu1 %v1037_v27 }
 0x27e   : > { %764 = vadd.xlane.f32.xlu0 %v763_v33  ;;  %620 = vadd.xlane.f32.xlu1 %v619_v36 }
 0x282   : > { %626 = vadd.xlane.f32.xlu0 %v625_v2  ;;  %1041 = vadd.xlane.f32.xlu1 %v1040_v17 }
 0x286   : > { %1047 = vadd.xlane.f32.xlu1 %v1046_v44 }
 0x2d3   : > { %v588_v3 = vpop.xlane.xlu0 %587 }
 0x2d4   : > { %v750_v45 = vpop.xlane.xlu1 %749 }
 0x2d5   : > { %v768_v18 = vsub.f32 %v588_v3, %v750_v45 }
 0x2d7   : > { %v582_v32 = vpop.xlane.xlu0 %581  ;;  %v776_v35 = vmax.f32 %v768_v18, 0.0 }
 0x2d9   : > { %v585_v0 = vpop.xlane.xlu1 %584  ;;  %v784_v46 = vadd.f32 %v2027_v53, %v776_v35 }
 0x2db   : > { %v744_v48 = vpop.xlane.xlu0 %743  ;;  %1539 = vlog2.f32 %v784_v46 }
 0x2dc   : > { %v766_v51 = vsub.f32 %v582_v32, %v744_v48 }
 0x2dd   : > { %v747_v59 = vpop.xlane.xlu1 %746 }
 0x2de   : > { %v774_v34 = vmax.f32 %v766_v51, 0.0  ;;  %v767_v52 = vsub.f32 %v585_v0, %v747_v59 }
 0x2df   : > { %v591_v55 = vpop.xlane.xlu0 %590 }
 0x2e0   : > { %v782_v5 = vadd.f32 %v2042_v4, %v774_v34  ;;  %v775_v11 = vmax.f32 %v767_v52, 0.0 }
 0x2e2   : > { %1541 = vlog2.f32 %v782_v5  ;;  %v783_v13 = vadd.f32 %v2050_v30, %v775_v11 }
 0x2e3   : > { %v612_v10 = vpop.xlane.xlu1 %611  ;;  %v753_v50 = vpop.xlane.xlu0 %752 }
 0x2e4   : > { %v769_v16 = vsub.f32 %v591_v55, %v753_v50  ;;  %1543 = vlog2.f32 %v783_v13 }
 0x2e5   : > { %v1540_v9 = vpop.eup %1539 }
 0x2e6   : > { %v777_v21 = vmax.f32 %v769_v16, 0.0  ;;  %v795_v57 = vmul.f32 0.6931472, %v1540_v9 }
 0x2e7   : > { %v1033_v20 = vpop.xlane.xlu1 %1032  ;;  %v600_v53 = vpop.xlane.xlu0 %599 }
 0x2e8   : > { %v785_v14 = vadd.f32 %v2070_v40, %v777_v21  ;;  %v1051_v27 = vsub.f32 %v612_v10, %v1033_v20  ;;  %v808_v8 = vsub.f32 %v2008_v31, %v795_v57 }
 0x2ea   : > { %1545 = vlog2.f32 %v785_v14  ;;  %v1059_v4 = vmax.f32 %v1051_v27, 0.0  ;;  %v820_v15 = vsel %vm741_vm2, %v808_v8, 0.0 }
 0x2eb   : > { %v606_v33 = vpop.xlane.xlu1 %605  ;;  %v762_v36 = vpop.xlane.xlu0 %761  ;;  %821 = vadd.xlane.f32.xlu0 %v820_v15 }
 0x2ec   : > { %v1542_v2 = vpop.eup %1541  ;;  %v1067_v30 = vadd.f32 %v2085_v54, %v1059_v4  ;;  %v772_v17 = vsub.f32 %v600_v53, %v762_v36 }
 0x2ed   : > { %v791_v44 = vmul.f32 0.6931472, %v1542_v2 }
 0x2ee   : > { %1547 = vlog2.f32 %v1067_v30  ;;  %v780_v3 = vmax.f32 %v772_v17, 0.0  ;;  %v1544_v35 = vpop.eup %1543 }
 0x2ef   : > { %v615_v45 = vpop.xlane.xlu1 %614  ;;  %v594_v18 = vpop.xlane.xlu0 %593  ;;  %v806_v40 = vsub.f32 %v2013_v38, %v791_v44  ;;  %v793_v34 = vmul.f32 0.6931472, %v1544_v35 }
 0x2f0   : > { %v788_v31 = vadd.f32 %v2090_v62, %v780_v3 }
 0x2f1   : > { %v814_v32 = vsel %vm741_vm2, %v806_v40, 0.0  ;;  %v807_v9 = vsub.f32 %v2018_v43, %v793_v34 }
 0x2f2   : > { %1549 = vlog2.f32 %v788_v31  ;;  %815 = vadd.xlane.f32.xlu0 %v814_v32 }
 0x2f3   : > { %v1036_v0 = vpop.xlane.xlu1 %1035  ;;  %v756_v46 = vpop.xlane.xlu0 %755  ;;  %v817_v14 = vsel %vm741_vm2, %v807_v9, 0.0 }
 0x2f4   : > { %v1546_v48 = vpop.eup %1545  ;;  %v1052_v54 = vsub.f32 %v615_v45, %v1036_v0  ;;  %v770_v51 = vsub.f32 %v594_v18, %v756_v46 }
 0x2f5   : > { %v797_v59 = vmul.f32 0.6931472, %v1546_v48 }
 0x2f6   : > { %v1060_v52 = vmax.f32 %v1052_v54, 0.0  ;;  %v778_v55 = vmax.f32 %v770_v51, 0.0 }
 0x2f7   : > { %v1030_v5 = vpop.xlane.xlu1 %1029  ;;  %v603_v11 = vpop.xlane.xlu0 %602  ;;  %v809_v38 = vsub.f32 %v2023_v47, %v797_v59 }
 0x2f8   : > { %v1548_v10 = vpop.eup %1547  ;;  %v1068_v62 = vadd.f32 %v2117_v58, %v1060_v52  ;;  %v786_v50 = vadd.f32 %v2113_v28, %v778_v55 }
 0x2f9   : > { %v823_v13 = vsel %vm741_vm2, %v809_v38, 0.0  ;;  %v1078_v16 = vmul.f32 0.6931472, %v1548_v10 }
 0x2fa   : > { %1551 = vlog2.f32 %v1068_v62  ;;  %824 = vadd.xlane.f32.xlu1 %v823_v13 }
 0x2fb   : > { %1553 = vlog2.f32 %v786_v50  ;;  %v624_v21 = vpop.xlane.xlu1 %623  ;;  %v597_v20 = vpop.xlane.xlu0 %596  ;;  %v1091_v53 = vsub.f32 %v2032_v49, %v1078_v16 }
 0x2fc   : > { %v1550_v57 = vpop.eup %1549 }
 0x2fd   : > { %v1103_v47 = vsel %vm741_vm2, %v1091_v53, 0.0  ;;  %v803_v58 = vmul.f32 0.6931472, %v1550_v57 }
 0x2fe   : > { %1104 = vadd.xlane.f32.xlu0 %v1103_v47  ;;  %818 = vadd.xlane.f32.xlu1 %v817_v14 }
 0x2ff   : > { %v1045_v28 = vpop.xlane.xlu1 %1044  ;;  %v759_v27 = vpop.xlane.xlu0 %758  ;;  %v812_v8 = vsub.f32 %v2035_v56, %v803_v58 }
 0x300   : > { %v771_v43 = vsub.f32 %v597_v20, %v759_v27  ;;  %v1055_v48 = vsub.f32 %v624_v21, %v1045_v28 }
 0x301   : > { %v832_v4 = vsel %vm741_vm2, %v812_v8, 0.0 }
 0x302   : > { %v779_v15 = vmax.f32 %v771_v43, 0.0  ;;  %833 = vadd.xlane.f32.xlu1 %v832_v4  ;;  %v1063_v55 = vmax.f32 %v1055_v48, 0.0 }
 0x303   : > { %v618_v36 = vpop.xlane.xlu1 %617  ;;  %v1027_v2 = vpop.xlane.xlu0 %1026 }
 0x304   : > { %v1552_v49 = vpop.eup %1551  ;;  %v787_v30 = vadd.f32 %v2147_v22, %v779_v15  ;;  %v1049_v17 = vsub.f32 %v606_v33, %v1027_v2  ;;  %v1071_v50 = vadd.f32 %v2151_v63, %v1063_v55 }
 0x305   : > { %v1554_v44 = vpop.eup %1553  ;;  %v1080_v3 = vmul.f32 0.6931472, %v1552_v49 }
 0x306   : > { %v1057_v45 = vmax.f32 %v1049_v17, 0.0  ;;  %v799_v18 = vmul.f32 0.6931472, %v1554_v44  ;;  %1555 = vlog2.f32 %v787_v30 }
 0x307   : > { %v1039_v40 = vpop.xlane.xlu1 %1038  ;;  %v609_v31 = vpop.xlane.xlu0 %608  ;;  %v1092_v56 = vsub.f32 %v2065_v1, %v1080_v3 }
 0x308   : > { %v1065_v32 = vadd.f32 %v2157_v24, %v1057_v45  ;;  %v1053_v35 = vsub.f32 %v618_v36, %v1039_v40  ;;  %v1050_v0 = vsub.f32 %v609_v31, %v1030_v5  ;;  %v810_v46 = vsub.f32 %v2060_v39, %v799_v18 }
 0x309   : > { %v1106_v54 = vsel %vm741_vm2, %v1092_v56, 0.0  ;;  %v854_v56 = vlaneseq }
 0x30a   : > { %1557 = vlog2.f32 %v1065_v32  ;;  %v1061_v22 = vmax.f32 %v1053_v35, 0.0  ;;  %v1058_v33 = vmax.f32 %v1050_v0, 0.0  ;;  %1107 = vadd.xlane.f32.xlu0 %v1106_v54  ;;  %v826_v51 = vsel %vm741_vm2, %v810_v46, 0.0 }
 0x30b   : > { %827 = vadd.xlane.f32.xlu1 %v826_v51  ;;  %v621_v59 = vpop.xlane.xlu1 %620  ;;  %v765_v34 = vpop.xlane.xlu0 %764  ;;  %v2234_v35 = vand.u32 127, %v854_v56  ;;  %v2237_v48 = vshrl.u32 %v854_v56, 7 }
 0x30c   : > { %v1069_v1 = vadd.f32 %v2167_v25, %v1061_v22  ;;  %v1066_v24 = vadd.f32 %v2125_v6, %v1058_v33  ;;  %v773_v52 = vsub.f32 %v603_v11, %v765_v34 }
 0x30d   : > { %v860_v0 = vadd.s32 4294967288, %v2234_v35  ;;  %v874_v51 = vadd.s32 4294967272, %v2234_v35 }
 0x30e   : > { %1559 = vlog2.f32 %v1069_v1  ;;  %v781_v39 = vmax.f32 %v773_v52, 0.0  ;;  %v881_v1 = vadd.s32 4294967264, %v2234_v35 }
 0x30f   : > { %1561 = vlog2.f32 %v1066_v24  ;;  %v1042_v5 = vpop.xlane.xlu1 %1041  ;;  %v627_v9 = vpop.xlane.xlu0 %626  ;;  %v863_v54 = vsub.s32 %v860_v0, %v2237_v48  ;;  %v888_v24 = vadd.s32 4294967256, %v2234_v35 }
 0x310   : > { %v789_v38 = vadd.f32 %v2169_v29, %v781_v39  ;;  %v1054_v10 = vsub.f32 %v621_v59, %v1042_v5  ;;  %v1556_v62 = vpop.eup %1555  ;;  %v858_v59 = vsub.s32 %v2234_v35, %v2237_v48 }
 0x311   : > { %v801_v16 = vmul.f32 0.6931472, %v1556_v62  ;;  %v1149_v62 = vadd.s32 4294967216, %v2234_v35 }
 0x312   : > { %1563 = vlog2.f32 %v789_v38  ;;  %v1062_v13 = vmax.f32 %v1054_v10, 0.0  ;;  %v877_v10 = vsub.s32 %v874_v51, %v2237_v48 }
 0x313   : > { %v1048_v21 = vpop.xlane.xlu1 %1047  ;;  %v811_v20 = vsub.f32 %v2098_v60, %v801_v16  ;;  %1565 = vlog2.f32 %v1071_v50  ;;  %v884_v16 = vsub.s32 %v881_v1, %v2237_v48 }
 0x314   : > { %v1558_v25 = vpop.eup %1557  ;;  %v1070_v6 = vadd.f32 %v2177_v37, %v1062_v13  ;;  %v1056_v11 = vsub.f32 %v627_v9, %v1048_v21  ;;  %v895_v13 = vadd.s32 4294967248, %v2234_v35  ;;  %v2252_v21 = vadd.s32 4294967208, %v2234_v35 }
 0x315   : > { %v1074_v53 = vmul.f32 0.6931472, %v1558_v25  ;;  %v829_v29 = vsel %vm741_vm2, %v811_v20, 0.0  ;;  %v891_v25 = vsub.s32 %v888_v24, %v2237_v48 }
 0x316   : > { %1567 = vlog2.f32 %v1070_v6  ;;  %v1064_v57 = vmax.f32 %v1056_v11, 0.0  ;;  %830 = vadd.xlane.f32.xlu1 %v829_v29  ;;  %v1142_v6 = vadd.s32 4294967224, %v2234_v35  ;;  %v1137_v29 = vadd.s32 4294967232, %v2234_v35 }
 0x317   : > { %v1089_v63 = vsub.f32 %v2109_v61, %v1074_v53 }
 0x318   : > { %v1560_v47 = vpop.eup %1559  ;;  %v1072_v14 = vadd.f32 %v2182_v41, %v1064_v57 }
 0x319   : > { %v1562_v58 = vpop.eup %1561  ;;  %v1097_v28 = vsel %vm741_vm2, %v1089_v63, 0.0  ;;  %v1082_v27 = vmul.f32 0.6931472, %v1560_v47  ;;  %v1152_v47 = vsub.s32 %v1149_v62, %v2237_v48 }
 0x31a   : > { %1569 = vlog2.f32 %v1072_v14  ;;  %v1076_v37 = vmul.f32 0.6931472, %v1562_v58  ;;  %1098 = vadd.xlane.f32.xlu1 %v1097_v28  ;;  %v898_v58 = vsub.s32 %v895_v13, %v2237_v48  ;;  %v902_v28 = vadd.s32 4294967240, %v2234_v35 }
 0x31b   : > { %v1093_v15 = vsub.f32 %v2123_v26, %v1082_v27 }
 0x31c   : > { %v1564_v60 = vpop.eup %1563  ;;  %v1090_v8 = vsub.f32 %v2075_v42, %v1076_v37 }
 0x31d   : > { %v805_v43 = vmul.f32 0.6931472, %v1564_v60  ;;  %v1566_v36 = vpop.eup %1565  ;;  %v1109_v30 = vsel %vm741_vm2, %v1093_v15, 0.0  ;;  %v1159_v60 = vsub.s32 %v2252_v21, %v2237_v48  ;;  %v1140_v15 = vsub.s32 %v1137_v29, %v2237_v48 }
 0x31e   : > { %v1100_v4 = vsel %vm741_vm2, %v1090_v8, 0.0  ;;  %v1086_v17 = vmul.f32 0.6931472, %v1566_v36  ;;  %v1145_v8 = vsub.s32 %v1142_v6, %v2237_v48 }
 0x31f   : > { %1101 = vadd.xlane.f32.xlu0 %v1100_v4  ;;  %v813_v61 = vsub.f32 %v2133_v12, %v805_v43 }
 0x320   : > { %v1568_v41 = vpop.eup %1567  ;;  %v1095_v26 = vsub.f32 %v2101_v23, %v1086_v17  ;;  %v905_v17 = vsub.s32 %v902_v28, %v2237_v48 }
 0x321   : > { %v835_v2 = vsel %vm741_vm2, %v813_v61, 0.0  ;;  %v1084_v49 = vmul.f32 0.6931472, %v1568_v41 }
 0x322   : > { %836 = vadd.xlane.f32.xlu1 %v835_v2  ;;  %v1115_v40 = vsel %vm741_vm2, %v1095_v26, 0.0 }
 0x323   : > { %1110 = vadd.xlane.f32.xlu0 %v1109_v30  ;;  %v1094_v42 = vsub.f32 %v2145_v7, %v1084_v49  ;;  %v1163_v49 = vadd.s32 4294967200, %v2234_v35 }
 0x324   : > { %v1570_v44 = vpop.eup %1569 }
 0x325   : > { %v1112_v3 = vsel %vm741_vm2, %v1094_v42, 0.0  ;;  %v1088_v45 = vmul.f32 0.6931472, %v1570_v44 }
 0x327   : > { %1113 = vadd.xlane.f32.xlu0 %v1112_v3  ;;  %v1096_v12 = vsub.f32 %v2154_v19, %v1088_v45  ;;  %v867_v19 = vadd.s32 4294967280, %v2234_v35 }
 0x329   : > { %v1118_v18 = vsel %vm741_vm2, %v1096_v12, 0.0  ;;  %v870_v52 = vsub.s32 %v867_v19, %v2237_v48  ;;  %vm1192_vm2 = vcmask 1040896  }
 0x32a   : > { %1119 = vadd.xlane.f32.xlu1 %v1118_v18 }
 0x32b   : > { %1116 = vadd.xlane.f32.xlu0 %v1115_v40 }
 0x378   : > { %v822_v7 = vpop.xlane.xlu0 %821 }
 0x379   : > { %v840_v38 = vmul.f32 -0.05952381, %v822_v7 }
 0x37b   : > { %v871_v63 = vrot.slane %v840_v38, %v870_v52 }
 0x37f   : > { %v816_v23 = vpop.xlane.xlu0 %815 }
 0x380   : > { %v838_v34 = vmul.f32 -0.05952381, %v816_v23  ;;  %v1184_v23 = vadd.s32 4294967176, %v2234_v35 }
 0x382   : > { %v859_v50 = vrot.slane %v838_v34, %v858_v59 }
 0x387   : > { %v825_v31 = vpop.xlane.xlu1 %824 }
 0x388   : > { %v841_v11 = vmul.f32 -0.05952381, %v825_v31  ;;  %v1170_v31 = vadd.s32 4294967192, %v2234_v35 }
 0x38a   : > { %v878_v43 = vrot.slane %v841_v11, %v877_v10  ;;  %v1173_v59 = vsub.s32 %v1170_v31, %v2237_v48 }
 0x38b   : > { %v819_v32 = vpop.xlane.xlu1 %818  ;;  %v1105_v39 = vpop.xlane.xlu0 %1104 }
 0x38c   : > { %v839_v22 = vmul.f32 -0.05952381, %v819_v32  ;;  %v1123_v42 = vmul.f32 -0.05952381, %v1105_v39  ;;  %v1166_v32 = vsub.s32 %v1163_v49, %v2237_v48 }
 0x38e   : > { %v864_v55 = vrot.slane %v839_v22, %v863_v54  ;;  %v1153_v19 = vrot.slane %v1123_v42, %v1152_v47 }
 0x38f   : > { %v834_v46 = vpop.xlane.xlu1 %833 }
 0x390   : > { %v866_v20 = vsel %vm865_vm3, %v864_v55, %v859_v50  ;;  %v844_v41 = vmul.f32 -0.05952381, %v834_v46  ;;  %v1187_v55 = vsub.s32 %v1184_v23, %v2237_v48 }
 0x391   : > { %v873_v37 = vsel %vm872_vm4, %v871_v63, %v866_v20 }
 0x392   : > { %v880_v30 = vsel %vm879_vm5, %v878_v43, %v873_v37  ;;  %v899_v56 = vrot.slane %v844_v41, %v898_v58 }
 0x397   : > { %v1108_v53 = vpop.xlane.xlu0 %1107 }
 0x398   : > { %v828_v33 = vpop.xlane.xlu1 %827  ;;  %v1124_v7 = vmul.f32 -0.05952381, %v1108_v53 }
 0x399   : > { %v842_v9 = vmul.f32 -0.05952381, %v828_v33  ;;  %v1177_v33 = vadd.s32 4294967184, %v2234_v35 }
 0x39a   : > { %v1160_v52 = vrot.slane %v1124_v7, %v1159_v60 }
 0x39b   : > { %v885_v27 = vrot.slane %v842_v9, %v884_v16  ;;  %v1180_v35 = vsub.s32 %v1177_v33, %v2237_v48 }
 0x39d   : > { %v887_v44 = vsel %vm886_vm6, %v885_v27, %v880_v30 }
 0x3a3   : > { %v831_v5 = vpop.xlane.xlu1 %830 }
 0x3a4   : > { %v843_v57 = vmul.f32 -0.05952381, %v831_v5 }
 0x3a6   : > { %v892_v4 = vrot.slane %v843_v57, %v891_v25 }
 0x3a7   : > { %v1099_v14 = vpop.xlane.xlu1 %1098 }
 0x3a8   : > { %v1121_v36 = vmul.f32 -0.05952381, %v1099_v14  ;;  %v894_v26 = vsel %vm893_vm7, %v892_v4, %v887_v44 }
 0x3a9   : > { %v901_v54 = vsel %vm900_vm9, %v899_v56, %v894_v26 }
 0x3aa   : > { %v1141_v12 = vrot.slane %v1121_v36, %v1140_v15 }
 0x3ac   : > { %v1102_v61 = vpop.xlane.xlu0 %1101 }
 0x3ad   : > { %v1122_v2 = vmul.f32 -0.05952381, %v1102_v61 }
 0x3af   : > { %v1146_v3 = vrot.slane %v1122_v2, %v1145_v8  ;;  %v837_v45 = vpop.xlane.xlu1 %836 }
 0x3b0   : > { %v845_v18 = vmul.f32 -0.05952381, %v837_v45  ;;  %v1111_v40 = vpop.xlane.xlu0 %1110 }
 0x3b1   : > { %v1148_v0 = vsel %vm1147_vm8, %v1146_v3, %v1141_v12  ;;  %v1125_v22 = vmul.f32 -0.05952381, %v1111_v40 }
 0x3b2   : > { %v906_v46 = vrot.slane %v845_v18, %v905_v17  ;;  %v1155_v1 = vsel %vm1154_vm10, %v1153_v19, %v1148_v0 }
 0x3b3   : > { %v1167_v39 = vrot.slane %v1125_v22, %v1166_v32  ;;  %v1162_v38 = vsel %vm1161_vm13, %v1160_v52, %v1155_v1 }
 0x3b4   : > { %v908_v51 = vsel %vm907_vm11, %v906_v46, %v901_v54  ;;  %v1114_v34 = vpop.xlane.xlu0 %1113 }
 0x3b5   : > { %v1126_v24 = vmul.f32 -0.05952381, %v1114_v34  ;;  %911 = vst.msk [vmem:[%s142_s16] sm:$0x1] %vm910_vm12, %v908_v51  ;;  %v1169_v9 = vsel %vm1168_vm14, %v1167_v39, %v1162_v38 }
 0x3b7   : > { %v1120_v5 = vpop.xlane.xlu1 %1119  ;;  %v1174_v10 = vrot.slane %v1126_v24, %v1173_v59 }
 0x3b8   : > { %v1128_v62 = vmul.f32 -0.05952381, %v1120_v5  ;;  %v1117_v50 = vpop.xlane.xlu0 %1116 }
 0x3b9   : > { %v1127_v13 = vmul.f32 -0.05952381, %v1117_v50  ;;  %v1176_v25 = vsel %vm1175_vm15, %v1174_v10, %v1169_v9 }
 0x3ba   : > { %v1188_v16 = vrot.slane %v1128_v62, %v1187_v55 }
 0x3bb   : > { %v1181_v21 = vrot.slane %v1127_v13, %v1180_v35 }
 0x3bd   : > { %v1183_v6 = vsel %vm1182_vm0, %v1181_v21, %v1176_v25 }
 0x3be   : > { %v1190_v48 = vsel %vm1189_vm1, %v1188_v16, %v1183_v6 }
 0x3bf   : > { %1193 = vst.msk [vmem:[%s142_s16] sm:$0x1] %vm1192_vm2, %v1190_v48 }
 0x3c0   : > { %1596 = shalt.err (!%p1593_p8)
}
 0x3c1   : > { %s1597_s7 = scalar_lea.hbm %s2287_s29, 16  ;;  %s1601_s10 = scalar_lea.hbm %s2334_s3, 64 }
 0x3c2   : > { %p1598_p9 = scmp.ne.s32.totalorder %s2287_s29, %s1597_s7  ;;  %p1602_p0 = scmp.lt.u32.totalorder %s2287_s29, %s2334_s3 }
 0x3c3   : > { %p1603_p1 = scmp.lt.u32.totalorder %s1601_s10, %s1597_s7  ;;  %p1605_p3 = scmp.lt.u32.totalorder %s1597_s7, %s2287_s29 }
 0x3c4   : > { %p1599_p12 = pnand %p1598_p9, %p1712_p10 }
 0x3c5   : > { %p1604_p2 = por %p1603_p1, %p1602_p0 }
 0x3c6   : > { %p1600_p13 = pneg %p1599_p12 }
 0x3c7   : > { %p1606_p4 = por %p1605_p3, %p1604_p2 }
 0x3c9   : > { %p1607_p5 = pnand %p1606_p4, %p1600_p13 }
 0x3cb   : > { %1610 = shalt.err (!%p1607_p5)
}
 0x3cc   : > { %1393 = dma.vmem_to_hbm [thread:$0]  (%p1712_p10), %s2289_s23, 16, %s2287_s29, %s1195_s20  }
 0x3cd PF: > { %p1399_p6 = scmp.ge.s32.totalorder %s1647_s19, 2  ;;  %s1219_s13 = sand.u32 1, %s1635_s17  }
 0x3ce   : > { %s1220_s14 = scalar_lea.sflag [#allocation5], %s1219_s13 }
 0x3cf   : > { %p1396_p7 = pnand %p1399_p6, %p1716_p11 }
 0x3d1   : > { %1630 = dma.done.wait (!%p1396_p7), %s1220_s14, 16  }
 0x3d2   : > { %1632 = vsyncadd (!%p1396_p7), %s1220_s14, 4294967280  ;;  %p19_p8 = scmp.ge.s32.totalorder %s1699_s22, 6   ;;  %s2337_s17 = smov %s1639_s18 }
 0x3d3   : > { %s2338_s18 = smov %s1643_s0  ;;  %s2339_s0 = smov %s1710_s25 }
 0x3d4   : > { %s2340_s19 = smov %s1699_s22  ;;  %21 = sbr.rel (!%p19_p8) target bundleno = 18 (0x12), region = 65 }
 0x3db   :  { %1224 = vsyncpa [#allocation5], 1 }
 0x3dc   :  { %1226 = vsyncpa [#allocation5 + $0x1], 1 }

</bundles_post_ra>
